<compile_context>
chip_gen: v7x
topology: tpu7x:2x2x1
jax: 0.10.0
libtpu: 0.0.40
codegen_flags: <defaults>
</compile_context>

<pallas_src>
import functools

import jax
import jax.numpy as jnp
import numpy as np
from jax.experimental import pallas as pl
from jax.experimental.pallas import tpu as pltpu

_LANE = 128
_BIG = 1e30          # "infinite" squared distance for padded visual words


def _round_up(x, m):
    return ((x + m - 1) // m) * m


def _vmem_budget_bytes():
    """Generation-aware scoped-VMEM budget (v7x has only 64 MiB per TC)."""
    try:
        phys = int(pltpu.get_tpu_info().vmem_capacity_bytes)
    except Exception:
        phys = 64 * 1024 * 1024                     # conservative fallback
    # 128 MiB parts (v5e/v6e) -> ~96 MiB scoped; 64 MiB parts (v7x) -> ~40 MiB.
    return int(min(phys - 24 * 1024 * 1024, 96 * 1024 * 1024))


def _bow_kernel(feat_ref, w_a_ref, w_b_ref, kbias_ref, codes_ref, bow_ref,
                acc_ref, *, temperature, bow_pool, num_rows, row_tile,
                n_inner, fuse_hi, has_row_pad):
    """One (batch, row-split, row-tile) grid step.

    feat_ref  : (1, TL, Cpad)        cropped features (channels on lanes), f32
    w_a_ref   : (2*Cpad|Cpad, Kpad)  bf16 embedding^T "hi" part (stacked twice
                                     when the 256-deep MXU fusion is enabled)
    w_b_ref   : (Cpad, Kpad)         bf16 embedding^T "lo" part
    kbias_ref : (1, Kpad)            -temp*||e_k||^2 (soft) or ||e_k||^2 (hard)
    codes_ref : (1, Kpad, TL)        per-location codes, stored TRANSPOSED
    bow_ref   : (1, 1, 1, Kpad)      un-normalized pooled BoW partial
    acc_ref   : (1, Kpad)            VMEM scratch accumulator
    """
    p = pl.program_id(1)
    lt = pl.program_id(2)

    @pl.when(lt == 0)
    def _():
        acc_ref[...] = jnp.zeros_like(acc_ref)

    f = feat_ref[0]                                  # (TL, Cpad) f32
    # hi/lo bf16 split of the features (weights are pre-split in the wrapper).
    f_hi = f.astype(jnp.bfloat16)
    f_lo = (f - f_hi.astype(jnp.float32)).astype(jnp.bfloat16)

    # cross = f . e^T at ~fp32 accuracy from bf16 MXU products.  ||f||^2 is
    # omitted (constant per row: cancels in softmax and argmin).
    if fuse_hi:
        # [f_hi | f_lo] @ [w_hi ; w_hi]: one 2*Cpad-deep pass that fills the
        # 256-deep MXU contraction on v6e/v7x (fuses the first two products).
        f_cat = jnp.concatenate([f_hi, f_lo], axis=-1)          # (TL, 2*Cpad)
        cross = jnp.dot(f_cat, w_a_ref[...],
                        preferred_element_type=jnp.float32)
    else:
        cross = jnp.dot(f_hi, w_a_ref[...],
                        preferred_element_type=jnp.float32)
        cross = cross + jnp.dot(f_lo, w_a_ref[...],
                                preferred_element_type=jnp.float32)
    cross = cross + jnp.dot(f_hi, w_b_ref[...],
                            preferred_element_type=jnp.float32)
    # cross: (TL, Kpad)

    kbias = kbias_ref[...]                           # (1, Kpad)
    if temperature is None:
        # Hard assignment: one-hot at the FIRST minimal distance
        # (matches torch.min + scatter_ tie-breaking).
        dist = kbias - 2.0 * cross
        kpad = dist.shape[-1]
        col_ids = jax.lax.broadcasted_iota(jnp.int32, dist.shape, 1)
        dmin = jnp.min(dist, axis=-1, keepdims=True)
        first_min = jnp.min(jnp.where(dist <= dmin, col_ids, kpad),
                            axis=-1, keepdims=True)
        codes = (col_ids == first_min).astype(jnp.float32)
    else:
        # softmax(-temp * dist) == softmax(2*temp*cross - temp*||e||^2)
        logits = cross * (2.0 * temperature) + kbias
        m = jnp.max(logits, axis=-1, keepdims=True)
        ex = jnp.exp(logits - m)
        denom = jnp.sum(ex, axis=-1, keepdims=True)
        inv = pl.reciprocal(denom, approx=True)      # EUP slot, not a divide
        inv = inv * (2.0 - denom * inv)              # one Newton step -> ~fp32
        codes = ex * inv

    # Store codes transposed (K on sublanes, spatial on lanes): the wrapper's
    # NCHW conversion becomes a cheap slice + reshape instead of an extra
    # HBM round trip through a transpose.  The XLU transpose has slack here.
    codes_ref[...] = codes.T[None].astype(codes_ref.dtype)

    def _accumulate(vals):
        if bow_pool == "max":
            acc_ref[...] = jnp.maximum(acc_ref[...],
                                       jnp.max(vals, axis=0, keepdims=True))
        else:  # "avg" -> plain sum; the division by L happens in the wrapper
            acc_ref[...] = acc_ref[...] + jnp.sum(vals, axis=0, keepdims=True)

    if not has_row_pad:
        _accumulate(codes)
    else:
        # Padded spatial rows exist only in trailing tiles: only mask the
        # pooled-BoW update for tiles that actually straddle the boundary.
        tile_start = (p * n_inner + lt) * row_tile
        is_full = tile_start + row_tile <= num_rows

        @pl.when(is_full)
        def _():
            _accumulate(codes)

        @pl.when(jnp.logical_not(is_full))
        def _():
            row_ids = tile_start + jax.lax.broadcasted_iota(
                jnp.int32, (row_tile, 1), 0)
            _accumulate(jnp.where(row_ids < num_rows, codes, 0.0))

    @pl.when(lt == pl.num_programs(2) - 1)
    def _():
        bow_ref[...] = acc_ref[...][None, None].astype(bow_ref.dtype)


@functools.partial(jax.jit,
                   static_argnames=("inv_delta", "min_distance_mean",
                                    "bow_pool", "row_tile", "num_row_splits"))
def bow_extractor_forward(features, embedding, *, inv_delta=15.0,
                          min_distance_mean=0.5, bow_pool="max",
                          row_tile=1024, num_row_splits=None):
    """One BoWExtractor level (eval mode). features: NCHW, embedding: (K, C)."""
    B, C, H, W = features.shape
    K, Ce = embedding.shape
    assert Ce == C
    assert bow_pool in ("max", "avg")
    Hc, Wc = H - 2, W - 2
    L = Hc * Wc

    Cpad = _round_up(C, _LANE)
    Kpad = _round_up(K, _LANE)
    fuse_hi = Cpad <= 128      # 2*Cpad fills the 256-deep MXU on v6e/v7x

    # --- generation-aware tile size / VMEM budget --------------------------
    budget = _vmem_budget_bytes()
    w_a_rows = 2 * Cpad if fuse_hi else Cpad
    weight_bytes = (w_a_rows + Cpad) * Kpad * 2 + 2 * Kpad * 4
    per_row_bytes = (2 * Cpad * 4        # feature input (double-buffered f32)
                     + 6 * Cpad          # f_hi / f_lo / concat bf16 temporaries
                     + 2 * Kpad * 4      # codes output (double-buffered f32)
                     + 4 * Kpad * 4)     # cross / exp / codes / codes^T temps
    tl_cap = max(_LANE,
                 ((budget - weight_bytes) // per_row_bytes) // _LANE * _LANE)
    # TL multiple of 128 so the transposed codes store stays lane-dense.
    TL = max(_LANE, min(_round_up(int(row_tile), _LANE),
                        _round_up(L, _LANE), tl_cap))
    n_tiles = -(-L // TL)

    # Row-split "parallel" axis: keeps both v7x TensorCores busy when the
    # batch alone cannot (B == 1).  Harmless (P == 1) otherwise.
    P = num_row_splits if num_row_splits is not None else (2 if B == 1 else 1)
    P = max(1, min(int(P), n_tiles))
    n_inner = -(-n_tiles // P)
    Lpad = P * n_inner * TL
    has_row_pad = Lpad != L

    temp = (None if inv_delta is None
            else float(inv_delta) / float(min_distance_mean))

    # NCHW -> crop borders -> (B, Lpad, Cpad), channels on the lane axis.
    # TODO(synk): accept NHWC features (or DMA + crop from HBM in-kernel) to
    # drop this XLA transpose round trip at production sizes.
    f = features[:, :, 1:-1, 1:-1]
    f = jnp.transpose(f, (0, 2, 3, 1)).reshape(B, L, C).astype(jnp.float32)
    f = jnp.pad(f, ((0, 0), (0, Lpad - L), (0, Cpad - C)))

    e = embedding.astype(jnp.float32)
    e2 = jnp.sum(e * e, axis=1)[None, :]                       # (1, K), hoisted
    if temp is None:
        kbias = jnp.pad(e2, ((0, 0), (0, Kpad - K)), constant_values=_BIG)
    else:
        kbias = jnp.pad(-temp * e2, ((0, 0), (0, Kpad - K)),
                        constant_values=-_BIG)
    emb_t = jnp.pad(e, ((0, Kpad - K), (0, Cpad - C))).T       # (Cpad, Kpad)
    # hi/lo bf16 split of the weights, hoisted out of the kernel (done once).
    w_hi = emb_t.astype(jnp.bfloat16)
    w_lo = (emb_t - w_hi.astype(jnp.float32)).astype(jnp.bfloat16)
    w_a = jnp.concatenate([w_hi, w_hi], axis=0) if fuse_hi else w_hi
    w_b = w_lo

    kernel = functools.partial(
        _bow_kernel, temperature=temp, bow_pool=bow_pool, num_rows=L,
        row_tile=TL, n_inner=n_inner, fuse_hi=fuse_hi, has_row_pad=has_row_pad)

    # TODO(synk): for very large K add a K grid axis with online softmax so the
    # (Cpad,Kpad) weights / (TL,Kpad) temporaries stay inside the VMEM budget.
    codes_pad, bow_pad = pl.pallas_call(
        kernel,
        out_shape=(jax.ShapeDtypeStruct((B, Kpad, Lpad), jnp.float32),
                   jax.ShapeDtypeStruct((B, P, 1, Kpad), jnp.float32)),
        grid_spec=pltpu.PrefetchScalarGridSpec(
            num_scalar_prefetch=0,
            grid=(B, P, n_inner),
            in_specs=[
                pl.BlockSpec((1, TL, Cpad),
                             lambda b, p, lt: (b, p * n_inner + lt, 0)),
                # Grid-invariant weights / bias: single-buffered (no point
                # double-buffering a constant index_map; halves their VMEM).
                pl.BlockSpec((w_a_rows, Kpad), lambda b, p, lt: (0, 0),
                             pipeline_mode=pl.Buffered(1)),
                pl.BlockSpec((Cpad, Kpad), lambda b, p, lt: (0, 0),
                             pipeline_mode=pl.Buffered(1)),
                pl.BlockSpec((1, Kpad), lambda b, p, lt: (0, 0),
                             pipeline_mode=pl.Buffered(1)),
            ],
            out_specs=[
                pl.BlockSpec((1, Kpad, TL),
                             lambda b, p, lt: (b, 0, p * n_inner + lt)),
                pl.BlockSpec((1, 1, 1, Kpad), lambda b, p, lt: (b, p, 0, 0)),
            ],
            scratch_shapes=[pltpu.VMEM((1, Kpad), jnp.float32)]),
        compiler_params=pltpu.CompilerParams(
            dimension_semantics=("parallel", "parallel", "arbitrary"),
            vmem_limit_bytes=budget),
    )(f, w_a, w_b, kbias)

    # Codes were emitted transposed -> NCHW is now just slice + reshape.
    codes = codes_pad[:, :K, :L].reshape(B, K, Hc, Wc)

    # Reduce per-row-split BoW partials and L1-normalize (tiny (B,P,K) op).
    if bow_pool == "max":
        bow = jnp.max(bow_pad[:, :, 0, :K], axis=1)
    else:
        bow = jnp.sum(bow_pad[:, :, 0, :K], axis=1) * (1.0 / float(L))
    bow = bow / jnp.maximum(jnp.sum(jnp.abs(bow), axis=1, keepdims=True), 1e-12)
    return bow, codes


def bow_extractor_multiple_levels_forward(features_list, level_params):
    """BoWExtractorMultipleLevels.forward: returns [ (bow_l0, bow_l1, ...),
    (codes_l0, codes_l1, ...) ] like list(zip(*per_level_outputs))."""
    per_level = [bow_extractor_forward(f, p["embedding"],
                                       inv_delta=p["inv_delta"],
                                       min_distance_mean=p["min_distance_mean"],
                                       bow_pool=p["bow_pool"])
                 for f, p in zip(features_list, level_params)]
    bows, codes = zip(*per_level)
    return [bows, codes]


def _ref_forward(features, embedding, inv_delta, min_distance_mean, bow_pool):
    """Pure-JAX reference matching the PyTorch eval-mode forward."""
    f = features[:, :, 1:-1, 1:-1]
    e2 = jnp.sum(embedding ** 2, axis=1)
    cross = jnp.einsum("bchw,kc->bkhw", f, embedding,
                       precision=jax.lax.Precision.HIGHEST)
    f2 = jnp.sum(f ** 2, axis=1, keepdims=True)
    dist = f2 - 2.0 * cross + e2[None, :, None, None]
    if inv_delta is None:
        enc = jnp.argmin(dist, axis=1)
        codes = jax.nn.one_hot(enc, embedding.shape[0], axis=1,
                               dtype=jnp.float32)
    else:
        codes = jax.nn.softmax(-(inv_delta / min_distance_mean) * dist, axis=1)
    if bow_pool == "max":
        bow = jnp.max(codes, axis=(2, 3))
    else:
        bow = jnp.mean(codes, axis=(2, 3))
    bow = bow / jnp.maximum(jnp.sum(jnp.abs(bow), axis=1, keepdims=True), 1e-12)
    return bow, codes


if __name__ == "__main__":
    key = jax.random.PRNGKey(0)
    k_f0, k_f1, k_f2, k_e0, k_e1 = jax.random.split(key, 5)

    # Two BoW levels (as opts_list would specify).
    level_params = [
        dict(embedding=jnp.maximum(
                 jax.random.normal(k_e0, (64, 32), jnp.float32), 0.0),
             inv_delta=15.0, min_distance_mean=0.5, bow_pool="max"),
        dict(embedding=jnp.maximum(
                 jax.random.normal(k_e1, (128, 64), jnp.float32), 0.0),
             inv_delta=10.0, min_distance_mean=0.5, bow_pool="avg"),
    ]
    features = [
        jax.random.normal(k_f0, (2, 32, 16, 16), jnp.float32),   # level 0 (NCHW)
        jax.random.normal(k_f1, (2, 64, 8, 8), jnp.float32),     # level 1 (NCHW)
    ]

    bows, codes = bow_extractor_multiple_levels_forward(features, level_params)
    jax.block_until_ready(bows)
    jax.block_until_ready(codes)

    # Verify against the pure-JAX reference of the PyTorch forward.
    # (Tolerance slightly loosened vs fp32: bf16 hi/lo-split cross term under a
    #  20-30x softmax temperature; approx reciprocal + Newton step means codes
    #  sum to ~1 per location, not exactly 1.)
    for lvl, (ft, p) in enumerate(zip(features, level_params)):
        bow_ref, codes_ref = _ref_forward(ft, p["embedding"], p["inv_delta"],
                                          p["min_distance_mean"], p["bow_pool"])
        np.testing.assert_allclose(np.asarray(bows[lvl]), np.asarray(bow_ref),
                                   rtol=2e-3, atol=2e-4)
        np.testing.assert_allclose(np.asarray(codes[lvl]), np.asarray(codes_ref),
                                   rtol=2e-3, atol=2e-4)

    # Also exercise the B == 1 path with a forced row split (the v7x 2-TC
    # "parallel" spatial split) and the straddling-tile row mask.
    f_small = jax.random.normal(k_f2, (1, 32, 16, 16), jnp.float32)
    bow_s, codes_s = bow_extractor_forward(
        f_small, level_params[0]["embedding"], inv_delta=15.0,
        min_distance_mean=0.5, bow_pool="max", row_tile=128, num_row_splits=2)
    jax.block_until_ready((bow_s, codes_s))
    bow_r, codes_r = _ref_forward(f_small, level_params[0]["embedding"],
                                  15.0, 0.5, "max")
    np.testing.assert_allclose(np.asarray(bow_s), np.asarray(bow_r),
                               rtol=2e-3, atol=2e-4)
    np.testing.assert_allclose(np.asarray(codes_s), np.asarray(codes_r),
                               rtol=2e-3, atol=2e-4)

    print("KERNEL_OK")
</pallas_src>

<mosaic_0001>
module attributes {stable_mosaic.version = 11 : i64} {
  func.func @_bow_kernel(%arg0: i32, %arg1: i32, %arg2: i32, %arg3: memref<1x256x128xf32, #tpu.memory_space<vmem>>, %arg4: memref<256x128xbf16, #tpu.memory_space<vmem>>, %arg5: memref<128x128xbf16, #tpu.memory_space<vmem>>, %arg6: memref<1x128xf32, #tpu.memory_space<vmem>>, %arg7: memref<1x128x256xf32, #tpu.memory_space<vmem>>, %arg8: memref<1x1x1x128xf32, #tpu.memory_space<vmem>>, %arg9: memref<1x128xf32, #tpu.memory_space<vmem>>) attributes {dimension_semantics = [#tpu.dimension_semantics<parallel>, #tpu.dimension_semantics<parallel>, #tpu.dimension_semantics<arbitrary>], iteration_bounds = array<i64: 2, 1, 1>, scalar_prefetch = 0 : i64, scratch_operands = 1 : i64, tpu.core_type = #tpu.core_type<tc>, window_params = [{transform_indices = @transform_0, window_bounds = array<i64: 1, 256, 128>}, {pipeline_mode = #tpu.pipeline_mode<synchronous>, transform_indices = @transform_1, window_bounds = array<i64: 256, 128>}, {pipeline_mode = #tpu.pipeline_mode<synchronous>, transform_indices = @transform_2, window_bounds = array<i64: 128, 128>}, {pipeline_mode = #tpu.pipeline_mode<synchronous>, transform_indices = @transform_3, window_bounds = array<i64: 1, 128>}, {transform_indices = @transform_4, window_bounds = array<i64: 1, 128, 256>}, {transform_indices = @transform_5, window_bounds = array<i64: 1, 1, 1, 128>}]} {
    %c0_i32 = arith.constant 0 : i32
    %0 = arith.cmpi eq, %arg2, %c0_i32 : i32
    %1 = arith.extui %0 : i1 to i32
    %c0_i32_0 = arith.constant 0 : i32
    %2 = arith.cmpi ne, %1, %c0_i32_0 : i32
    scf.if %2 {
      %cst_22 = arith.constant 0.000000e+00 : f32
      %50 = vector.broadcast %cst_22 : f32 to vector<1x128xf32>
      %c0_23 = arith.constant 0 : index
      %c0_24 = arith.constant 0 : index
      %51 = vector.load %arg9[%c0_23, %c0_24] : memref<1x128xf32, #tpu.memory_space<vmem>>, vector<1x128xf32>
      tpu.vector_store %arg9[%c0_23, %c0_24], %50 {strides = array<i32>} : memref<1x128xf32, #tpu.memory_space<vmem>>, vector<1x128xf32>,
    } else {
    }
    %c0 = arith.constant 0 : index
    %c0_1 = arith.constant 0 : index
    %c0_2 = arith.constant 0 : index
    %3 = vector.load %arg3[%c0, %c0_1, %c0_2] : memref<1x256x128xf32, #tpu.memory_space<vmem>>, vector<1x256x128xf32>
    %4 = vector.shape_cast %3 : vector<1x256x128xf32> to vector<256x128xf32>
    %5 = arith.truncf %4 : vector<256x128xf32> to vector<256x128xbf16>
    %6 = arith.extf %5 : vector<256x128xbf16> to vector<256x128xf32>
    %7 = arith.subf %4, %6 : vector<256x128xf32>
    %8 = arith.truncf %7 : vector<256x128xf32> to vector<256x128xbf16>
    %9 = tpu.concatenate %5, %8 in 1 : vector<256x128xbf16>, vector<256x128xbf16> -> vector<256x256xbf16>
    %c0_3 = arith.constant 0 : index
    %c0_4 = arith.constant 0 : index
    %10 = vector.load %arg4[%c0_3, %c0_4] : memref<256x128xbf16, #tpu.memory_space<vmem>>, vector<256x128xbf16>
    %cst = arith.constant dense<0.000000e+00> : vector<256x128xf32>
    %11 = tpu.matmul %9, %10, %cst {dimension_numbers = #tpu.dot_dimension_numbers<[1], [0], [0], [1], [0, 0, 1, 1], [], []>} : vector<256x256xbf16>, vector<256x128xbf16>, vector<256x128xf32> -> vector<256x128xf32>
    %c0_5 = arith.constant 0 : index
    %c0_6 = arith.constant 0 : index
    %12 = vector.load %arg5[%c0_5, %c0_6] : memref<128x128xbf16, #tpu.memory_space<vmem>>, vector<128x128xbf16>
    %cst_7 = arith.constant dense<0.000000e+00> : vector<256x128xf32>
    %13 = tpu.matmul %5, %12, %cst_7 {dimension_numbers = #tpu.dot_dimension_numbers<[1], [0], [0], [1], [0, 0, 1, 1], [], []>} : vector<256x128xbf16>, vector<128x128xbf16>, vector<256x128xf32> -> vector<256x128xf32>
    %14 = arith.addf %11, %13 : vector<256x128xf32>
    %c0_8 = arith.constant 0 : index
    %c0_9 = arith.constant 0 : index
    %15 = vector.load %arg6[%c0_8, %c0_9] : memref<1x128xf32, #tpu.memory_space<vmem>>, vector<1x128xf32>
    %cst_10 = arith.constant 6.000000e+01 : f32
    %16 = vector.broadcast %cst_10 : f32 to vector<256x128xf32>
    %17 = arith.mulf %14, %16 : vector<256x128xf32>
    %18 = vector.broadcast %15 : vector<1x128xf32> to vector<256x128xf32>
    %19 = arith.addf %17, %18 : vector<256x128xf32>
    %cst_11 = arith.constant dense<0xFF800000> : vector<256xf32>
    %20 = vector.multi_reduction <maximumf>, %19, %cst_11 [1] : vector<256x128xf32> to vector<256xf32>
    %21 = vector.shape_cast %20 : vector<256xf32> to vector<256x1xf32>
    %22 = vector.broadcast %21 : vector<256x1xf32> to vector<256x128xf32>
    %23 = arith.subf %19, %22 : vector<256x128xf32>
    %24 = math.exp %23 : vector<256x128xf32>
    %cst_12 = arith.constant dense<0.000000e+00> : vector<256xf32>
    %25 = vector.multi_reduction <add>, %24, %cst_12 [1] : vector<256x128xf32> to vector<256xf32>
    %26 = vector.shape_cast %25 : vector<256xf32> to vector<256x1xf32>
    %27 = tpu.reciprocal %26 {approx = true} : vector<256x1xf32> -> vector<256x1xf32>
    %28 = arith.mulf %26, %27 : vector<256x1xf32>
    %cst_13 = arith.constant 2.000000e+00 : f32
    %29 = vector.broadcast %cst_13 : f32 to vector<256x1xf32>
    %30 = arith.subf %29, %28 : vector<256x1xf32>
    %31 = arith.mulf %27, %30 : vector<256x1xf32>
    %32 = vector.broadcast %31 : vector<256x1xf32> to vector<256x128xf32>
    %33 = arith.mulf %24, %32 : vector<256x128xf32>
    %34 = tpu.transpose %33, [1, 0] : vector<256x128xf32> -> vector<128x256xf32>
    %35 = vector.shape_cast %34 : vector<128x256xf32> to vector<1x128x256xf32>
    %c0_14 = arith.constant 0 : index
    %c0_15 = arith.constant 0 : index
    %c0_16 = arith.constant 0 : index
    %36 = vector.load %arg7[%c0_14, %c0_15, %c0_16] : memref<1x128x256xf32, #tpu.memory_space<vmem>>, vector<1x128x256xf32>
    tpu.vector_store %arg7[%c0_14, %c0_15, %c0_16], %35 {strides = array<i32>} : memref<1x128x256xf32, #tpu.memory_space<vmem>>, vector<1x128x256xf32>,
    %c1_i32 = arith.constant 1 : i32
    %37 = arith.muli %arg1, %c1_i32 : i32
    %38 = arith.addi %37, %arg2 : i32
    %c256_i32 = arith.constant 256 : i32
    %39 = arith.muli %38, %c256_i32 : i32
    %c256_i32_17 = arith.constant 256 : i32
    %40 = arith.addi %39, %c256_i32_17 : i32
    %c196_i32 = arith.constant 196 : i32
    %41 = arith.cmpi sle, %40, %c196_i32 : i32
    %42 = arith.extui %41 : i1 to i32
    %c0_i32_18 = arith.constant 0 : i32
    %43 = arith.cmpi ne, %42, %c0_i32_18 : i32
    scf.if %43 {
      %c0_22 = arith.constant 0 : index
      %c0_23 = arith.constant 0 : index
      %50 = vector.load %arg9[%c0_22, %c0_23] : memref<1x128xf32, #tpu.memory_space<vmem>>, vector<1x128xf32>
      %cst_24 = arith.constant dense<0xFF800000> : vector<128xf32>
      %51 = vector.multi_reduction <maximumf>, %33, %cst_24 [0] : vector<256x128xf32> to vector<128xf32>
      %52 = vector.shape_cast %51 : vector<128xf32> to vector<1x128xf32>
      %53 = arith.maximumf %50, %52 : vector<1x128xf32>
      %c0_25 = arith.constant 0 : index
      %c0_26 = arith.constant 0 : index
      %54 = vector.load %arg9[%c0_25, %c0_26] : memref<1x128xf32, #tpu.memory_space<vmem>>, vector<1x128xf32>
      tpu.vector_store %arg9[%c0_25, %c0_26], %53 {strides = array<i32>} : memref<1x128xf32, #tpu.memory_space<vmem>>, vector<1x128xf32>,
    } else {
    }
    %true = arith.constant true
    %44 = arith.xori %41, %true : i1
    %45 = arith.extui %44 : i1 to i32
    %c0_i32_19 = arith.constant 0 : i32
    %46 = arith.cmpi ne, %45, %c0_i32_19 : i32
    scf.if %46 {
      %50 = tpu.iota {dimensions = array<i32: 0>} : vector<256x1xi32>
      %51 = vector.broadcast %39 : i32 to vector<256x1xi32>
      %52 = arith.addi %51, %50 : vector<256x1xi32>
      %c196_i32_22 = arith.constant 196 : i32
      %53 = vector.broadcast %c196_i32_22 : i32 to vector<256x1xi32>
      %54 = arith.cmpi slt, %52, %53 : vector<256x1xi32>
      %cst_23 = arith.constant 0.000000e+00 : f32
      %55 = vector.shape_cast %54 : vector<256x1xi1> to vector<256x1xi1>
      %56 = vector.broadcast %55 : vector<256x1xi1> to vector<256x128xi1>
      %57 = vector.broadcast %cst_23 : f32 to vector<256x128xf32>
      %58 = arith.select %56, %33, %57 : vector<256x128xi1>, vector<256x128xf32>
      %c0_24 = arith.constant 0 : index
      %c0_25 = arith.constant 0 : index
      %59 = vector.load %arg9[%c0_24, %c0_25] : memref<1x128xf32, #tpu.memory_space<vmem>>, vector<1x128xf32>
      %cst_26 = arith.constant dense<0xFF800000> : vector<128xf32>
      %60 = vector.multi_reduction <maximumf>, %58, %cst_26 [0] : vector<256x128xf32> to vector<128xf32>
      %61 = vector.shape_cast %60 : vector<128xf32> to vector<1x128xf32>
      %62 = arith.maximumf %59, %61 : vector<1x128xf32>
      %c0_27 = arith.constant 0 : index
      %c0_28 = arith.constant 0 : index
      %63 = vector.load %arg9[%c0_27, %c0_28] : memref<1x128xf32, #tpu.memory_space<vmem>>, vector<1x128xf32>
      tpu.vector_store %arg9[%c0_27, %c0_28], %62 {strides = array<i32>} : memref<1x128xf32, #tpu.memory_space<vmem>>, vector<1x128xf32>,
    } else {
    }
    %c0_i32_20 = arith.constant 0 : i32
    %47 = arith.cmpi eq, %arg2, %c0_i32_20 : i32
    %48 = arith.extui %47 : i1 to i32
    %c0_i32_21 = arith.constant 0 : i32
    %49 = arith.cmpi ne, %48, %c0_i32_21 : i32
    scf.if %49 {
      %c0_22 = arith.constant 0 : index
      %c0_23 = arith.constant 0 : index
      %50 = vector.load %arg9[%c0_22, %c0_23] : memref<1x128xf32, #tpu.memory_space<vmem>>, vector<1x128xf32>
      %51 = vector.shape_cast %50 : vector<1x128xf32> to vector<1x1x1x128xf32>
      %c0_24 = arith.constant 0 : index
      %c0_25 = arith.constant 0 : index
      %c0_26 = arith.constant 0 : index
      %c0_27 = arith.constant 0 : index
      %52 = vector.load %arg8[%c0_24, %c0_25, %c0_26, %c0_27] : memref<1x1x1x128xf32, #tpu.memory_space<vmem>>, vector<1x1x1x128xf32>
      tpu.vector_store %arg8[%c0_24, %c0_25, %c0_26, %c0_27], %51 {strides = array<i32>} : memref<1x1x1x128xf32, #tpu.memory_space<vmem>>, vector<1x1x1x128xf32>,
    } else {
    }
    return
  }
  func.func @transform_0(%arg0: i32, %arg1: i32, %arg2: i32) -> (i32, i32, i32) {
    %c1_i32 = arith.constant 1 : i32
    %0 = arith.muli %arg1, %c1_i32 : i32
    %1 = arith.addi %0, %arg2 : i32
    %c0_i32 = arith.constant 0 : i32
    %c0_i32_0 = arith.constant 0 : i32
    return %arg0, %1, %c0_i32 : i32, i32, i32
  }
  func.func @transform_1(%arg0: i32, %arg1: i32, %arg2: i32) -> (i32, i32) {
    %c0_i32 = arith.constant 0 : i32
    %c0_i32_0 = arith.constant 0 : i32
    %c0_i32_1 = arith.constant 0 : i32
    return %c0_i32, %c0_i32_0 : i32, i32
  }
  func.func @transform_2(%arg0: i32, %arg1: i32, %arg2: i32) -> (i32, i32) {
    %c0_i32 = arith.constant 0 : i32
    %c0_i32_0 = arith.constant 0 : i32
    %c0_i32_1 = arith.constant 0 : i32
    return %c0_i32, %c0_i32_0 : i32, i32
  }
  func.func @transform_3(%arg0: i32, %arg1: i32, %arg2: i32) -> (i32, i32) {
    %c0_i32 = arith.constant 0 : i32
    %c0_i32_0 = arith.constant 0 : i32
    %c0_i32_1 = arith.constant 0 : i32
    return %c0_i32, %c0_i32_0 : i32, i32
  }
  func.func @transform_4(%arg0: i32, %arg1: i32, %arg2: i32) -> (i32, i32, i32) {
    %c1_i32 = arith.constant 1 : i32
    %0 = arith.muli %arg1, %c1_i32 : i32
    %1 = arith.addi %0, %arg2 : i32
    %c0_i32 = arith.constant 0 : i32
    %c0_i32_0 = arith.constant 0 : i32
    return %arg0, %c0_i32, %1 : i32, i32, i32
  }
  func.func @transform_5(%arg0: i32, %arg1: i32, %arg2: i32) -> (i32, i32, i32, i32) {
    %c0_i32 = arith.constant 0 : i32
    %c0_i32_0 = arith.constant 0 : i32
    %c0_i32_1 = arith.constant 0 : i32
    return %arg0, %arg1, %c0_i32, %c0_i32_0 : i32, i32, i32, i32
  }
}

</mosaic_0001>

<bundles_post_ra>
// kernel: bow_extractor_forward.1
= control target key start
LH: loop header
LB: loop body
LE: loop exit
PB: predicated region body
PF: predicated region fallthrough
CT: control target
= control target key end

     0   :  { %s2387_s18 = smov 0   ;;  %s2389_s19 = smov 0   ;;  %s3160_s0 = inlined_call_operand.vmem [shape: f32[2,256,128], index: 0, kind: input, shape index: {}]   ;;  %s3161_s1 = inlined_call_operand.vmem [shape: bf16[256,128], index: 1, kind: input, shape index: {}]   ;;  %s3162_s2 = inlined_call_operand.vmem [shape: bf16[128,128], index: 2, kind: input, shape index: {}]   ;;  %s3163_s3 = inlined_call_operand.vmem [shape: f32[1,128], index: 3, kind: input, shape index: {}]   ;;  %s3164_s4 = inlined_call_operand.vmem [shape: f32[2,128,256], index: 4, kind: output, shape index: {0}]   ;;  %s3165_s5 = inlined_call_operand.vmem [shape: f32[2,1,1,128], index: 5, kind: output, shape index: {1}]  }
   0x1   :  { %s2391_s20 = smov 0  }
   0x2 LB: > { %s35_s21 = sadd.s32 1, %s2350_s19  ;;  %p1921_p0 = scmp.ge.s32.totalorder %s2354_s20, 1  ;;  %s2354_s20 = sphi %s2391_s20, %s16_s20   ;;  %s2350_s19 = sphi %s2389_s19, %s3167_s19   ;;  %s2346_s18 = sphi %s2387_s18, %s3166_s18  }
   0x3   : > { %p37_p1 = scmp.ge.s32.totalorder %s35_s21, 2  ;;  %p226_p2 = scmp.lt.s32.totalorder %s2354_s20, 3 }
   0x5   : > { %s3169_s21 = smov (%p37_p1, %s35_s21), 0  ;;  %p227_p3 = pnand %p1921_p0, %p226_p2 }
   0x6   : > { %v2180_v0 = vld [vmem:[%s3162_s2] sm:$0xff] (!%p227_p3)   ;;  %v2183_v3 = vld [vmem:[%s3162_s2 + $0x8] sm:$0xff] (!%p227_p3)   ;;  %v2186_v6 = vld [vmem:[%s3162_s2 + $0x10] sm:$0xff] (!%p227_p3)   ;;  %p272_p4 = scmp.lt.s32.totalorder (!%p227_p3), %s2346_s18, 1 }
   0x7   : > { %230 = sbr.rel (%p227_p3) target bundleno = 876 (0x36c), region = 36  ;;  %v2413_v1 = vld [vmem:[%s3161_s1 + $0x40] sm:$0xff] (!%p227_p3)   ;;  %2091 = vmatprep.subr.bf16.mxu0 (!%p227_p3), %v2180_v0  ;;  %v2428_v4 = vld [vmem:[%s3161_s1 + $0x48] sm:$0xff] (!%p227_p3)   ;;  %v2442_v7 = vld [vmem:[%s3161_s1 + $0x50] sm:$0xff] (!%p227_p3)  }
   0x8   : > { %v2418_v2 = vld [vmem:[%s3161_s1] sm:$0xff] (!%p227_p3)   ;;  %2139 = vmatprep.subr.bf16.mxu1 (!%p227_p3), %v2413_v1  ;;  %2092 = vmatpush3.bf16.msra.mxu0 (!%p227_p3), %v2180_v0  ;;  %v2433_v5 = vld [vmem:[%s3161_s1 + $0x8] sm:$0xff] (!%p227_p3)   ;;  %v2448_v8 = vld [vmem:[%s3161_s1 + $0x10] sm:$0xff] (!%p227_p3)  }
   0x9   : > { %2147 = vmatpush3.bf16.msra.mxu1 (!%p227_p3), %v2418_v2  ;;  %2093 = vmatprep.subr.bf16.mxu0 (!%p227_p3), %v2183_v3  ;;  %v2189_v9 = vld [vmem:[%s3162_s2 + $0x18] sm:$0xff] (!%p227_p3)   ;;  %v2192_v12 = vld [vmem:[%s3162_s2 + $0x20] sm:$0xff] (!%p227_p3)   ;;  %v2195_v15 = vld [vmem:[%s3162_s2 + $0x28] sm:$0xff] (!%p227_p3)  }
   0xa   : > { %2140 = vmatprep.subr.bf16.mxu1 (!%p227_p3), %v2428_v4  ;;  %v2457_v10 = vld [vmem:[%s3161_s1 + $0x58] sm:$0xff] (!%p227_p3)   ;;  %v2473_v13 = vld [vmem:[%s3161_s1 + $0x60] sm:$0xff] (!%p227_p3)   ;;  %v2491_v16 = vld [vmem:[%s3161_s1 + $0x68] sm:$0xff] (!%p227_p3)  }
   0xb   : > { %v2463_v11 = vld [vmem:[%s3161_s1 + $0x18] sm:$0xff] (!%p227_p3)   ;;  %v2481_v14 = vld [vmem:[%s3161_s1 + $0x20] sm:$0xff] (!%p227_p3)   ;;  %v2497_v17 = vld [vmem:[%s3161_s1 + $0x28] sm:$0xff] (!%p227_p3)  }
   0xc   : > { %2094 = vmatpush3.bf16.msra.mxu0 (!%p227_p3), %v2183_v3  ;;  %v2198_v18 = vld [vmem:[%s3162_s2 + $0x30] sm:$0xff] (!%p227_p3)   ;;  %v2201_v21 = vld [vmem:[%s3162_s2 + $0x38] sm:$0xff] (!%p227_p3)  }
   0xd   : > { %2148 = vmatpush3.bf16.msra.mxu1 (!%p227_p3), %v2433_v5  ;;  %2095 = vmatprep.subr.bf16.mxu0 (!%p227_p3), %v2186_v6  ;;  %v2507_v19 = vld [vmem:[%s3161_s1 + $0x70] sm:$0xff] (!%p227_p3)   ;;  %v2536_v25 = vld [vmem:[%s3161_s1 + $0x78] sm:$0xff] (!%p227_p3)  }
   0xe   : > { %2141 = vmatprep.subr.bf16.mxu1 %v2442_v7  ;;  %s3171_s18 = smov (!%p272_p4, %s2346_s18), 1  ;;  %v2519_v20 = vld [vmem:[%s3161_s1 + $0x30] sm:$0xff]   ;;  %v2553_v32 = vld [vmem:[%s3161_s1 + $0x38] sm:$0xff]  }
   0xf   : > { %s1953_s10 = sshll.u32 %s3171_s18, 8  ;;  %s299_s14 = scalar_lea.vmem %s3165_s5, %s3171_s18 }
  0x10   : > { %2096 = vmatpush3.bf16.msra.mxu0 %v2186_v6  ;;  %s2514_s23 = scalar_lea.vmem %s3160_s0, %s1953_s10  ;;  %s3113_s12 = scalar_lea.vmem %s3164_s4, %s1953_s10 }
  0x11   : > { %2149 = vmatpush3.bf16.msra.mxu1 %v2448_v8  ;;  %2097 = vmatprep.subr.bf16.mxu0 %v2189_v9  ;;  %v2526_v22 = vld [vmem:[%s2514_s23] sm:$0xff]  ;;  %v2529_v23 = vld [vmem:[%s2514_s23 + $0x8] sm:$0xff]  ;;  %v2544_v29 = vld [vmem:[%s2514_s23 + $0x10] sm:$0xff] }
  0x12   : > { %2142 = vmatprep.subr.bf16.mxu1 %v2457_v10  ;;  %v314_v24 = vld [vmem:[%s2514_s23 + $0x40] sm:$0xff]  ;;  %v2540_v26 = vpack.c.bf16 %v2529_v23, %v2526_v22  ;;  %v315_v27 = vld [vmem:[%s2514_s23 + $0x48] sm:$0xff]  ;;  %v2547_v30 = vld [vmem:[%s2514_s23 + $0x18] sm:$0xff] }
  0x13   : > { %v342_v28 = vpack.c.bf16 %v315_v27, %v314_v24  ;;  %v316_v31 = vld [vmem:[%s2514_s23 + $0x50] sm:$0xff]  ;;  %v310_v33 = vld [vmem:[%s2514_s23 + $0x20] sm:$0xff]  ;;  %v317_v34 = vld [vmem:[%s2514_s23 + $0x58] sm:$0xff]  ;;  %v2567_v41 = vpack.c.bf16 %v2547_v30, %v2544_v29 }
  0x14   : > { %2098 = vmatpush3.bf16.msra.mxu0 %v2189_v9  ;;  %2107 = vmatprep.mubr.bf16.mxu0 %v2540_v26  ;;  %v311_v37 = vld [vmem:[%s2514_s23 + $0x28] sm:$0xff]  ;;  %v2560_v38 = vpack.c.bf16 %v317_v34, %v316_v31  ;;  %v318_v39 = vld [vmem:[%s2514_s23 + $0x60] sm:$0xff]  ;;  %v320_v53 = vld [vmem:[%s2514_s23 + $0x70] sm:$0xff] }
  0x15   : > { %2150 = vmatpush3.bf16.msra.mxu1 %v2463_v11  ;;  %2099 = vmatprep.subr.bf16.mxu0 %v2192_v12  ;;  %v362_v35 = vunpack.c.l.bf16 %v342_v28  ;;  %v363_v36 = vunpack.c.h.bf16 %v342_v28  ;;  %v319_v40 = vld [vmem:[%s2514_s23 + $0x68] sm:$0xff]  ;;  %v2573_v47 = vpack.c.bf16 %v311_v37, %v310_v33  ;;  %v321_v54 = vld [vmem:[%s2514_s23 + $0x78] sm:$0xff]  ;;  %v312_v56 = vld [vmem:[%s2514_s23 + $0x30] sm:$0xff] }
  0x16   : > { %2143 = vmatprep.subr.bf16.mxu1 %v2473_v13  ;;  %v2569_v42 = vpack.c.bf16 %v319_v40, %v318_v39  ;;  %v364_v45 = vunpack.c.l.bf16 %v2560_v38  ;;  %v365_v46 = vunpack.c.h.bf16 %v2560_v38  ;;  %v313_v57 = vld [vmem:[%s2514_s23 + $0x38] sm:$0xff]  ;;  %v345_v60 = vpack.c.bf16 %v321_v54, %v320_v53 }
  0x17   : > { %v394_v43 = vsub.f32 %v314_v24, %v362_v35  ;;  %v395_v44 = vsub.f32 %v315_v27, %v363_v36  ;;  %v2587_v61 = vpack.c.bf16 %v313_v57, %v312_v56  ;;  %v358_v3 = vunpack.c.l.bf16 %v2573_v47 }
  0x18   : > { %2100 = vmatpush3.bf16.msra.mxu0 %v2192_v12  ;;  %v366_v48 = vunpack.c.l.bf16 %v2569_v42  ;;  %v396_v50 = vsub.f32 %v316_v31, %v364_v45  ;;  %v397_v51 = vsub.f32 %v317_v34, %v365_v46  ;;  %v367_v52 = vunpack.c.h.bf16 %v2569_v42  ;;  %v324_v31 = vld [vmem:[%s2514_s23 + $0x90] sm:$0xff]  ;;  %v329_v45 = vld [vmem:[%s2514_s23 + $0xb8] sm:$0xff]  ;;  %v330_v46 = vld [vmem:[%s2514_s23 + $0xc0] sm:$0xff] }
  0x19   : > { %2151 = vmatpush3.bf16.msra.mxu1 %v2481_v14  ;;  %2101 = vmatprep.subr.bf16.mxu0 %v2195_v15  ;;  %v422_v49 = vpack.c.bf16 %v395_v44, %v394_v43  ;;  %v368_v63 = vunpack.c.l.bf16 %v345_v60  ;;  %v369_v0 = vunpack.c.h.bf16 %v345_v60  ;;  %v2598_v9 = vsub.f32 %v310_v33, %v358_v3  ;;  %v325_v33 = vld [vmem:[%s2514_s23 + $0x98] sm:$0xff]  ;;  %v328_v44 = vld [vmem:[%s2514_s23 + $0xb0] sm:$0xff] }
  0x1a   : > { %2144 = vmatprep.subr.bf16.mxu1 %v2491_v16  ;;  %v423_v55 = vpack.c.bf16 %v397_v51, %v396_v50  ;;  %v398_v58 = vsub.f32 %v318_v39, %v366_v48  ;;  %v399_v59 = vsub.f32 %v319_v40, %v367_v52  ;;  %v347_v36 = vpack.c.bf16 %v325_v33, %v324_v31  ;;  %v326_v39 = vld [vmem:[%s2514_s23 + $0xa0] sm:$0xff]  ;;  %v327_v40 = vld [vmem:[%s2514_s23 + $0xa8] sm:$0xff]  ;;  %v336_v3 = vld [vmem:[%s2514_s23 + $0xf0] sm:$0xff] }
  0x1b   : > { %851 = vmatprep.mubr.bf16.mxu1 %v422_v49  ;;  %v349_v49 = vpack.c.bf16 %v329_v45, %v328_v44 }
  0x1c   : > { %2102 = vmatpush3.bf16.msra.mxu0 %v2195_v15  ;;  %v424_v62 = vpack.c.bf16 %v399_v59, %v398_v58  ;;  %v360_v15 = vunpack.c.l.bf16 %v2587_v61 }
  0x1d   : > { %2152 = vmatpush3.bf16.msra.mxu1 %v2497_v17  ;;  %2103 = vmatprep.subr.bf16.mxu0 %v2198_v18  ;;  %v376_v52 = vunpack.c.l.bf16 %v349_v49 }
  0x1e   : > { %2145 = vmatprep.subr.bf16.mxu1 %v2507_v19 }
  0x20   : > { %2104 = vmatpush3.bf16.msra.mxu0 %v2198_v18 }
  0x21   : > { %2153 = vmatpush3.bf16.msra.mxu1 %v2519_v20  ;;  %2105 = vmatprep.subr.bf16.mxu0 %v2201_v21 }
  0x22   : > { %2146 = vmatprep.subr.bf16.mxu1 %v2536_v25 }
  0x24   : > { %2106 = vmatpush3.bf16.msra.mxu0 %v2201_v21  ;;  %v361_v21 = vunpack.c.h.bf16 %v2587_v61 }
  0x25   : > { %2154 = vmatpush3.bf16.msra.mxu1 %v2553_v32  ;;  %1979 = vmatprep.subr.bf16.mxu0 %v2413_v1  ;;  %v322_v1 = vld [vmem:[%s2514_s23 + $0x80] sm:$0xff] }
  0x27   : > { %2108 = vmatmul.mubr.bf16.vlgmr.msra.gmra.mrb[0].mxu0 %v2567_v41 }
  0x28   : > { %852 = vmatmul.mubr.bf16.vlgmr.msra.gmra.mrb[0].mxu1 %v342_v28  ;;  %1980 = vmatpush3.bf16.msra.mxu0 %v2418_v2  ;;  %v323_v2 = vld [vmem:[%s2514_s23 + $0x88] sm:$0xff] }
  0x29   : > { %2111 = vmatprep.mubr.bf16.mxu0 %v2573_v47  ;;  %859 = vmatprep.mubr.bf16.mxu1 %v423_v55  ;;  %v346_v6 = vpack.c.bf16 %v323_v2, %v322_v1  ;;  %v334_v55 = vld [vmem:[%s2514_s23 + $0xe0] sm:$0xff] }
  0x2a   : > { %1981 = vmatprep.subr.bf16.mxu0 %v2428_v4  ;;  %v400_v4 = vsub.f32 %v320_v53, %v368_v63  ;;  %v377_v53 = vunpack.c.h.bf16 %v349_v49  ;;  %v355_v63 = vunpack.c.h.bf16 %v2540_v26 }
  0x2b   : > { %v370_v18 = vunpack.c.l.bf16 %v346_v6 }
  0x2c   : > { %1982 = vmatpush3.bf16.msra.mxu0 %v2433_v5  ;;  %v401_v5 = vsub.f32 %v321_v54, %v369_v0  ;;  %v333_v54 = vld [vmem:[%s2514_s23 + $0xd8] sm:$0xff]  ;;  %v409_v58 = vsub.f32 %v329_v45, %v377_v53 }
  0x2d   : > { %1983 = vmatprep.subr.bf16.mxu0 %v2442_v7  ;;  %v359_v7 = vunpack.c.h.bf16 %v2573_v47  ;;  %v402_v34 = vsub.f32 %v322_v1, %v370_v18 }
  0x2e   : > { %v425_v24 = vpack.c.bf16 %v401_v5, %v400_v4  ;;  %v387_v5 = vsub.f32 %v2529_v23, %v355_v63 }
  0x2f   : > { %2112 = vmatmul.mubr.bf16.gmra.mrb[4].mxu0 %v2587_v61  ;;  %v2601_v12 = vsub.f32 %v311_v37, %v359_v7  ;;  %v372_v37 = vunpack.c.l.bf16 %v347_v36 }
  0x30   : > { %860 = vmatmul.mubr.bf16.gmra.mrb[4].mxu1 %v2560_v38  ;;  %2115 = vmatprep.mubr.bf16.mxu0 %v342_v28  ;;  %v2608_v28 = vsub.f32 %v312_v56, %v360_v15  ;;  %v335_v56 = vld [vmem:[%s2514_s23 + $0xe8] sm:$0xff] }
  0x31   : > { %867 = vmatprep.mubr.bf16.mxu1 %v424_v62  ;;  %1984 = vmatpush3.bf16.msra.mxu0 %v2448_v8  ;;  %v371_v8 = vunpack.c.h.bf16 %v346_v6  ;;  %v420_v27 = vpack.c.bf16 %v2601_v12, %v2598_v9  ;;  %v354_v62 = vunpack.c.l.bf16 %v2540_v26 }
  0x32   : > { %1985 = vmatprep.subr.bf16.mxu0 %v2457_v10  ;;  %v2613_v10 = vsub.f32 %v313_v57, %v361_v21  ;;  %v408_v57 = vsub.f32 %v328_v44, %v376_v52 }
  0x33   : > { %v403_v35 = vsub.f32 %v323_v2, %v371_v8  ;;  %v386_v4 = vsub.f32 %v2526_v22, %v354_v62  ;;  %v357_v8 = vunpack.c.h.bf16 %v2567_v41 }
  0x34   : > { %v429_v0 = vpack.c.bf16 %v409_v58, %v408_v57  ;;  %v2676_v58 = vld [vmem:[%s3163_s3] ss:$0 sm:$0xff] }
  0x35   : > { %1986 = vmatpush3.bf16.msra.mxu0 %v2463_v11  ;;  %v421_v11 = vpack.c.bf16 %v2613_v10, %v2608_v28  ;;  %v418_v21 = vpack.c.bf16 %v387_v5, %v386_v4  ;;  %v389_v22 = vsub.f32 %v2547_v30, %v357_v8 }
  0x36   : > { %1987 = vmatprep.subr.bf16.mxu0 %v2473_v13  ;;  %v426_v13 = vpack.c.bf16 %v403_v35, %v402_v34 }
  0x37   : > { %2116 = vmatmul.mubr.bf16.gmra.mrb[8].mxu0 %v2560_v38  ;;  %v373_v38 = vunpack.c.h.bf16 %v347_v36 }
  0x38   : > { %868 = vmatmul.mubr.bf16.gmra.mrb[8].mxu1 %v2569_v42  ;;  %2119 = vmatprep.mubr.bf16.mxu0 %v2569_v42  ;;  %v404_v42 = vsub.f32 %v324_v31, %v372_v37 }
  0x39   : > { %875 = vmatprep.mubr.bf16.mxu1 %v425_v24  ;;  %1988 = vmatpush3.bf16.msra.mxu0 %v2481_v14  ;;  %v405_v14 = vsub.f32 %v325_v33, %v373_v38  ;;  %v356_v24 = vunpack.c.l.bf16 %v2567_v41 }
  0x3a   : > { %1989 = vmatprep.subr.bf16.mxu0 %v2491_v16  ;;  %v348_v16 = vpack.c.bf16 %v327_v40, %v326_v39 }
  0x3b   : > { %v388_v35 = vsub.f32 %v2544_v29, %v356_v24 }
  0x3c   : > { %v374_v43 = vunpack.c.l.bf16 %v348_v16 }
  0x3d   : > { %1990 = vmatpush3.bf16.msra.mxu0 %v2497_v17  ;;  %v427_v17 = vpack.c.bf16 %v405_v14, %v404_v42 }
  0x3e   : > { %1991 = vmatprep.subr.bf16.mxu0 %v2507_v19  ;;  %v375_v19 = vunpack.c.h.bf16 %v348_v16  ;;  %v406_v48 = vsub.f32 %v326_v39, %v374_v43 }
  0x3f   : > { %2120 = vmatmul.mubr.bf16.gmra.mrb[12].mxu0 %v345_v60 }
  0x40   : > { %876 = vmatmul.mubr.bf16.gmra.mrb[12].mxu1 %v345_v60  ;;  %2123 = vmatprep.mubr.bf16.mxu0 %v346_v6  ;;  %v352_v60 = vpack.c.bf16 %v335_v56, %v334_v55 }
  0x41   : > { %883 = vmatprep.mubr.bf16.mxu1 %v426_v13  ;;  %1992 = vmatpush3.bf16.msra.mxu0 %v2519_v20  ;;  %v331_v20 = vld [vmem:[%s2514_s23 + $0xc8] sm:$0xff]  ;;  %v419_v13 = vpack.c.bf16 %v389_v22, %v388_v35 }
  0x42   : > { %1993 = vmatprep.subr.bf16.mxu0 %v2536_v25  ;;  %v407_v25 = vsub.f32 %v327_v40, %v375_v19  ;;  %v350_v50 = vpack.c.bf16 %v331_v20, %v330_v46  ;;  %v382_v38 = vunpack.c.l.bf16 %v352_v60  ;;  %v383_v39 = vunpack.c.h.bf16 %v352_v60 }
  0x44   : > { %v428_v51 = vpack.c.bf16 %v407_v25, %v406_v48  ;;  %v378_v1 = vunpack.c.l.bf16 %v350_v50  ;;  %v379_v2 = vunpack.c.h.bf16 %v350_v50  ;;  %v414_v40 = vsub.f32 %v334_v55, %v382_v38 }
  0x45   : > { %1994 = vmatpush3.bf16.msra.mxu0 %v2553_v32  ;;  %v332_v32 = vld [vmem:[%s2514_s23 + $0xd0] sm:$0xff]  ;;  %v415_v42 = vsub.f32 %v335_v56, %v383_v39 }
  0x46   : > { %v351_v59 = vpack.c.bf16 %v333_v54, %v332_v32  ;;  %v410_v7 = vsub.f32 %v330_v46, %v378_v1  ;;  %v411_v15 = vsub.f32 %v331_v20, %v379_v2 }
  0x47   : > { %2124 = vmatmul.mubr.bf16.gmra.mrb[16].mxu0 %v347_v36  ;;  %v432_v14 = vpack.c.bf16 %v415_v42, %v414_v40 }
  0x48   : > { %884 = vmatmul.mubr.bf16.gmra.mrb[16].mxu1 %v346_v6  ;;  %2127 = vmatprep.mubr.bf16.mxu0 %v348_v16  ;;  %v337_v6 = vld [vmem:[%s2514_s23 + $0xf8] sm:$0xff]  ;;  %v430_v31 = vpack.c.bf16 %v411_v15, %v410_v7  ;;  %v380_v33 = vunpack.c.l.bf16 %v351_v59  ;;  %v381_v34 = vunpack.c.h.bf16 %v351_v59 }
  0x49   : > { %891 = vmatprep.mubr.bf16.mxu1 %v427_v17  ;;  %v353_v18 = vpack.c.bf16 %v337_v6, %v336_v3 }
  0x4a   : > { %v412_v23 = vsub.f32 %v332_v32, %v380_v33 }
  0x4b   : > { %v385_v17 = vunpack.c.h.bf16 %v353_v18 }
  0x4d   : > { %v417_v30 = vsub.f32 %v337_v6, %v385_v17 }
  0x4f   : > { %2128 = vmatmul.mubr.bf16.gmra.mrb[20].mxu0 %v349_v49 }
  0x50   : > { %892 = vmatmul.mubr.bf16.gmra.mrb[20].mxu1 %v347_v36  ;;  %2131 = vmatprep.mubr.bf16.mxu0 %v350_v50  ;;  %v413_v36 = vsub.f32 %v333_v54, %v381_v34 }
  0x51   : > { %899 = vmatprep.mubr.bf16.mxu1 %v428_v51 }
  0x52   : > { %v431_v37 = vpack.c.bf16 %v413_v36, %v412_v23 }
  0x57   : > { %2132 = vmatmul.mubr.bf16.gmra.mrb[24].mxu0 %v351_v59 }
  0x58   : > { %900 = vmatmul.mubr.bf16.gmra.mrb[24].mxu1 %v348_v16  ;;  %2135 = vmatprep.mubr.bf16.mxu0 %v352_v60  ;;  %v384_v16 = vunpack.c.l.bf16 %v353_v18 }
  0x59   : > { %907 = vmatprep.mubr.bf16.mxu1 %v429_v0 }
  0x5a   : > { %v416_v29 = vsub.f32 %v336_v3, %v384_v16 }
  0x5c   : > { %v433_v43 = vpack.c.bf16 %v417_v30, %v416_v29 }
  0x5f   : > { %2136 = vmatmul.mubr.bf16.gmra.mrb[28].mxu0 %v353_v18 }
  0x60   : > { %908 = vmatmul.mubr.bf16.gmra.mrb[28].mxu1 %v349_v49  ;;  %819 = vmatprep.mubr.bf16.mxu0 %v418_v21 }
  0x61   : > { %915 = vmatprep.mubr.bf16.mxu1 %v430_v31 }
  0x67   : > { %820 = vmatmul.mubr.bf16.vlgmr.msra.gmra.mrb[32].mxu0 %v2540_v26 }
  0x68   : > { %916 = vmatmul.mubr.bf16.gmra.mrb[32].mxu1 %v350_v50  ;;  %827 = vmatprep.mubr.bf16.mxu0 %v419_v13 }
  0x69   : > { %923 = vmatprep.mubr.bf16.mxu1 %v431_v37 }
  0x6f   : > { %828 = vmatmul.mubr.bf16.gmra.mrb[36].mxu0 %v2567_v41 }
  0x70   : > { %924 = vmatmul.mubr.bf16.gmra.mrb[36].mxu1 %v351_v59  ;;  %835 = vmatprep.mubr.bf16.mxu0 %v420_v27 }
  0x71   : > { %931 = vmatprep.mubr.bf16.mxu1 %v432_v14 }
  0x77   : > { %836 = vmatmul.mubr.bf16.gmra.mrb[40].mxu0 %v2573_v47 }
  0x78   : > { %932 = vmatmul.mubr.bf16.gmra.mrb[40].mxu1 %v352_v60  ;;  %843 = vmatprep.mubr.bf16.mxu0 %v421_v11 }
  0x79   : > { %939 = vmatprep.mubr.bf16.mxu1 %v433_v43 }
  0x7f   : > { %844 = vmatmul.mubr.bf16.gmra.mrb[44].mxu0 %v2587_v61 }
  0x80   : > { %940 = vmatmul.mubr.bf16.gmra.mrb[44].mxu1 %v353_v18 }
  0xfa   : > { %v2657_v26 = vpop.f32.mrb[0].mxu0 }
  0xfb   : > { %v2659_v41 = vpop.f32.mrb[1].mxu0  ;;  %v2019_v9 = vpop.f32.mrb[0].mxu1 }
  0xfc   : > { %v2661_v12 = vpop.f32.mrb[2].mxu0  ;;  %v2020_v27 = vpop.f32.mrb[1].mxu1 }
  0xfd   : > { %v2663_v19 = vpop.f32.mrb[3].mxu0  ;;  %v2021_v47 = vadd.f32 %v2020_v27, %v2019_v9  ;;  %v2022_v44 = vpop.f32.mrb[2].mxu1 }
  0xfe   : > { %v2023_v45 = vpop.f32.mrb[3].mxu1 }
  0xff   : > { %v2024_v46 = vadd.f32 %v2023_v45, %v2022_v44 }
 0x102   : > { %v2665_v28 = vpop.f32.mrb[4].mxu0 }
 0x103   : > { %v2667_v10 = vpop.f32.mrb[5].mxu0  ;;  %v2025_v61 = vpop.f32.mrb[4].mxu1 }
 0x104   : > { %v2669_v11 = vpop.f32.mrb[6].mxu0  ;;  %v2026_v20 = vpop.f32.mrb[5].mxu1 }
 0x105   : > { %v2671_v48 = vpop.f32.mrb[7].mxu0  ;;  %v2027_v25 = vadd.f32 %v2026_v20, %v2025_v61  ;;  %v2028_v49 = vpop.f32.mrb[6].mxu1 }
 0x106   : > { %v2029_v50 = vpop.f32.mrb[7].mxu1 }
 0x107   : > { %v2030_v51 = vadd.f32 %v2029_v50, %v2028_v49 }
 0x10a   : > { %v2117_v52 = vpop.f32.mrb[8].mxu0 }
 0x10b   : > { %v862_v53 = vadd.f32 %v2117_v52, %v2027_v25  ;;  %v596_v32 = vpop.f32.mrb[9].mxu0  ;;  %v2031_v54 = vpop.f32.mrb[8].mxu1 }
 0x10c   : > { %v854_v55 = vadd.f32 %v2021_v47, %v596_v32  ;;  %v2118_v56 = vpop.f32.mrb[10].mxu0  ;;  %v2032_v57 = vpop.f32.mrb[9].mxu1 }
 0x10d   : > { %v959_v59 = vmul.f32 60.0, %v862_v53  ;;  %v865_v60 = vadd.f32 %v2118_v56, %v2030_v51  ;;  %v599_v62 = vpop.f32.mrb[11].mxu0  ;;  %v2033_v63 = vadd.f32 %v2032_v57, %v2031_v54  ;;  %v2034_v0 = vpop.f32.mrb[10].mxu1 }
 0x10e   : > { %v857_v1 = vadd.f32 %v2024_v46, %v599_v62  ;;  %v2035_v2 = vpop.f32.mrb[11].mxu1  ;;  %v957_v3 = vmul.f32 60.0, %v854_v55 }
 0x10f   : > { %v2036_v6 = vadd.f32 %v2035_v2, %v2034_v0  ;;  %v2679_v4 = vadd.f32 %v2676_v58, %v959_v59  ;;  %v960_v7 = vmul.f32 60.0, %v865_v60 }
 0x110   : > { %v2683_v21 = vadd.f32 %v2676_v58, %v957_v3  ;;  %v958_v36 = vmul.f32 60.0, %v857_v1 }
 0x111   : > { %1039 = vmax.xlane.f32.xlu0 %v2679_v4  ;;  %v2693_v38 = vadd.f32 %v2676_v58, %v960_v7 }
 0x112   : > { %v2121_v5 = vpop.f32.mrb[12].mxu0  ;;  %v2699_v16 = vadd.f32 %v2676_v58, %v958_v36 }
 0x113   : > { %v2037_v15 = vpop.f32.mrb[12].mxu1  ;;  %v612_v18 = vpop.f32.mrb[13].mxu0 }
 0x114   : > { %v2685_v24 = vadd.f32 %v2033_v63, %v612_v18  ;;  %v2038_v8 = vpop.f32.mrb[13].mxu1  ;;  %v2122_v31 = vpop.f32.mrb[14].mxu0 }
 0x115   : > { %v2039_v33 = vadd.f32 %v2038_v8, %v2037_v15  ;;  %v2040_v34 = vpop.f32.mrb[14].mxu1  ;;  %1035 = vmax.xlane.f32.xlu0 %v2683_v21  ;;  %v615_v35 = vpop.f32.mrb[15].mxu0 }
 0x116   : > { %v2041_v22 = vpop.f32.mrb[15].mxu1  ;;  %v2688_v23 = vadd.f32 %v2036_v6, %v615_v35 }
 0x117   : > { %v2690_v13 = vadd.f32 %v2121_v5, %v2039_v33  ;;  %v2042_v37 = vadd.f32 %v2041_v22, %v2040_v34 }
 0x119   : > { %v2695_v39 = vadd.f32 %v2122_v31, %v2042_v37  ;;  %1041 = vmax.xlane.f32.xlu0 %v2693_v38 }
 0x11a   : > { %v2125_v40 = vpop.f32.mrb[16].mxu0 }
 0x11b   : > { %v2043_v42 = vpop.f32.mrb[16].mxu1  ;;  %v628_v14 = vpop.f32.mrb[17].mxu0 }
 0x11c   : > { %v2044_v17 = vpop.f32.mrb[17].mxu1  ;;  %v2126_v29 = vpop.f32.mrb[18].mxu0 }
 0x11d   : > { %v2045_v30 = vadd.f32 %v2044_v17, %v2043_v42  ;;  %v2046_v43 = vpop.f32.mrb[18].mxu1  ;;  %1037 = vmax.xlane.f32.xlu0 %v2699_v16  ;;  %v631_v9 = vpop.f32.mrb[19].mxu0 }
 0x11e   : > { %v2047_v27 = vpop.f32.mrb[19].mxu1 }
 0x11f   : > { %v886_v47 = vadd.f32 %v2045_v30, %v628_v14  ;;  %v2048_v44 = vadd.f32 %v2047_v27, %v2046_v43 }
 0x121   : > { %v965_v45 = vmul.f32 60.0, %v886_v47  ;;  %v889_v46 = vadd.f32 %v2048_v44, %v631_v9 }
 0x122   : > { %v2129_v61 = vpop.f32.mrb[20].mxu0 }
 0x123   : > { %v966_v20 = vmul.f32 60.0, %v889_v46  ;;  %v2049_v25 = vpop.f32.mrb[20].mxu1  ;;  %v644_v49 = vpop.f32.mrb[21].mxu0  ;;  %v2703_v50 = vadd.f32 %v2676_v58, %v965_v45 }
 0x124   : > { %v2050_v51 = vpop.f32.mrb[21].mxu1  ;;  %v2130_v52 = vpop.f32.mrb[22].mxu0 }
 0x125   : > { %v2051_v53 = vadd.f32 %v2050_v51, %v2049_v25  ;;  %v2052_v32 = vpop.f32.mrb[22].mxu1  ;;  %1051 = vmax.xlane.f32.xlu0 %v2703_v50  ;;  %v647_v54 = vpop.f32.mrb[23].mxu0  ;;  %v2707_v55 = vadd.f32 %v2676_v58, %v966_v20 }
 0x126   : > { %v2053_v56 = vpop.f32.mrb[23].mxu1 }
 0x127   : > { %v894_v57 = vadd.f32 %v2125_v40, %v2051_v53  ;;  %v2054_v59 = vadd.f32 %v2053_v56, %v2052_v32  ;;  %1053 = vmax.xlane.f32.xlu1 %v2707_v55 }
 0x129   : > { %v967_v60 = vmul.f32 60.0, %v894_v57  ;;  %v897_v62 = vadd.f32 %v2126_v29, %v2054_v59 }
 0x12a   : > { %v2710_v63 = vpop.f32.mrb[24].mxu0 }
 0x12b   : > { %v968_v0 = vmul.f32 60.0, %v897_v62  ;;  %v2055_v1 = vpop.f32.mrb[24].mxu1  ;;  %v660_v2 = vpop.f32.mrb[25].mxu0  ;;  %v2713_v3 = vadd.f32 %v2676_v58, %v967_v60 }
 0x12c   : > { %v2056_v6 = vpop.f32.mrb[25].mxu1  ;;  %v2715_v5 = vpop.f32.mrb[26].mxu0 }
 0x12d   : > { %v2057_v7 = vadd.f32 %v2056_v6, %v2055_v1  ;;  %v2058_v15 = vpop.f32.mrb[26].mxu1  ;;  %1055 = vmax.xlane.f32.xlu1 %v2713_v3  ;;  %v663_v18 = vpop.f32.mrb[27].mxu0  ;;  %v2719_v34 = vadd.f32 %v2676_v58, %v968_v0 }
 0x12e   : > { %v2059_v8 = vpop.f32.mrb[27].mxu1 }
 0x12f   : > { %v902_v31 = vadd.f32 %v2057_v7, %v644_v49  ;;  %v2060_v33 = vadd.f32 %v2059_v8, %v2058_v15 }
 0x131   : > { %v969_v35 = vmul.f32 60.0, %v902_v31  ;;  %v905_v22 = vadd.f32 %v2060_v33, %v647_v54  ;;  %1057 = vmax.xlane.f32.xlu1 %v2719_v34 }
 0x132   : > { %v2722_v36 = vpop.f32.mrb[28].mxu0 }
 0x133   : > { %v970_v37 = vmul.f32 60.0, %v905_v22  ;;  %v2061_v40 = vpop.f32.mrb[28].mxu1  ;;  %v2724_v42 = vpop.f32.mrb[29].mxu0  ;;  %v2727_v14 = vadd.f32 %v2676_v58, %v969_v35 }
 0x134   : > { %v2062_v17 = vpop.f32.mrb[29].mxu1  ;;  %v2729_v29 = vpop.f32.mrb[30].mxu0 }
 0x135   : > { %v2063_v30 = vadd.f32 %v2062_v17, %v2061_v40  ;;  %v2064_v43 = vpop.f32.mrb[30].mxu1  ;;  %1059 = vmax.xlane.f32.xlu1 %v2727_v14  ;;  %v2732_v9 = vpop.f32.mrb[31].mxu0  ;;  %v2735_v45 = vadd.f32 %v2676_v58, %v970_v37 }
 0x136   : > { %v2065_v27 = vpop.f32.mrb[31].mxu1 }
 0x137   : > { %v910_v47 = vadd.f32 %v2129_v61, %v2063_v30  ;;  %v2066_v44 = vadd.f32 %v2065_v27, %v2064_v43 }
 0x139   : > { %v971_v46 = vmul.f32 60.0, %v910_v47  ;;  %v913_v20 = vadd.f32 %v2130_v52, %v2066_v44  ;;  %1061 = vmax.xlane.f32.xlu1 %v2735_v45 }
 0x13a   : > { %v1995_v25 = vpop.f32.mrb[32].mxu0 }
 0x13b   : > { %v972_v49 = vmul.f32 60.0, %v913_v20  ;;  %v2067_v51 = vpop.f32.mrb[32].mxu1  ;;  %v1996_v53 = vpop.f32.mrb[33].mxu0  ;;  %v2739_v32 = vadd.f32 %v2676_v58, %v971_v46 }
 0x13c   : > { %v1997_v54 = vadd.f32 %v1996_v53, %v1995_v25  ;;  %v2068_v56 = vpop.f32.mrb[33].mxu1  ;;  %v1998_v57 = vpop.f32.mrb[34].mxu0 }
 0x13d   : > { %v2069_v59 = vadd.f32 %v2068_v56, %v2067_v51  ;;  %v2070_v61 = vpop.f32.mrb[34].mxu1  ;;  %1063 = vmax.xlane.f32.xlu1 %v2739_v32  ;;  %v1999_v60 = vpop.f32.mrb[35].mxu0  ;;  %v2744_v7 = vadd.f32 %v2676_v58, %v972_v49 }
 0x13e   : > { %v822_v62 = vadd.f32 %v1997_v54, %v2659_v41  ;;  %v2000_v52 = vadd.f32 %v1999_v60, %v1998_v57  ;;  %v2071_v0 = vpop.f32.mrb[35].mxu1 }
 0x13f   : > { %v918_v1 = vadd.f32 %v2069_v59, %v660_v2  ;;  %v2072_v6 = vadd.f32 %v2071_v0, %v2070_v61 }
 0x140   : > { %v949_v15 = vmul.f32 60.0, %v822_v62  ;;  %v825_v8 = vadd.f32 %v2000_v52, %v2663_v19 }
 0x141   : > { %v973_v31 = vmul.f32 60.0, %v918_v1  ;;  %v921_v33 = vadd.f32 %v2072_v6, %v663_v18  ;;  %1065 = vmax.xlane.f32.xlu1 %v2744_v7 }
 0x142   : > { %v2001_v35 = vpop.f32.mrb[36].mxu0  ;;  %v2749_v22 = vadd.f32 %v2676_v58, %v949_v15  ;;  %v950_v37 = vmul.f32 60.0, %v825_v8 }
 0x143   : > { %v2073_v41 = vpop.f32.mrb[36].mxu1  ;;  %v2002_v40 = vpop.f32.mrb[37].mxu0  ;;  %v2752_v2 = vadd.f32 %v2676_v58, %v973_v31  ;;  %v974_v20 = vmul.f32 60.0, %v921_v33 }
 0x144   : > { %v2003_v17 = vadd.f32 %v2002_v40, %v2001_v35  ;;  %v2074_v30 = vpop.f32.mrb[37].mxu1  ;;  %v2004_v43 = vpop.f32.mrb[38].mxu0  ;;  %1019 = vmax.xlane.f32.xlu0 %v2749_v22  ;;  %v2759_v51 = vadd.f32 %v2676_v58, %v950_v37 }
 0x145   : > { %v2075_v19 = vadd.f32 %v2074_v30, %v2073_v41  ;;  %v2076_v27 = vpop.f32.mrb[38].mxu1  ;;  %1067 = vmax.xlane.f32.xlu1 %v2752_v2  ;;  %v2005_v18 = vpop.f32.mrb[39].mxu0 }
 0x146   : > { %v830_v47 = vadd.f32 %v2657_v26, %v2003_v17  ;;  %v2006_v44 = vadd.f32 %v2005_v18, %v2004_v43  ;;  %v2077_v46 = vpop.f32.mrb[39].mxu1 }
 0x147   : > { %v926_v25 = vadd.f32 %v2710_v63, %v2075_v19  ;;  %v2078_v49 = vadd.f32 %v2077_v46, %v2076_v27  ;;  %v2768_v63 = vadd.f32 %v2676_v58, %v974_v20 }
 0x148   : > { %v951_v53 = vmul.f32 60.0, %v830_v47  ;;  %v833_v54 = vadd.f32 %v2661_v12, %v2006_v44 }
 0x149   : > { %v929_v56 = vadd.f32 %v2715_v5, %v2078_v49  ;;  %1021 = vmax.xlane.f32.xlu1 %v2759_v51  ;;  %v975_v61 = vmul.f32 60.0, %v926_v25 }
 0x14a   : > { %v952_v57 = vmul.f32 60.0, %v833_v54  ;;  %v2007_v59 = vpop.f32.mrb[40].mxu0  ;;  %v2765_v26 = vadd.f32 %v2676_v58, %v951_v53 }
 0x14b   : > { %v2079_v60 = vpop.f32.mrb[40].mxu1  ;;  %v2008_v62 = vpop.f32.mrb[41].mxu0  ;;  %v976_v35 = vmul.f32 60.0, %v929_v56  ;;  %v2778_v40 = vadd.f32 %v2676_v58, %v975_v61 }
 0x14c   : > { %v2009_v52 = vadd.f32 %v2008_v62, %v2007_v59  ;;  %v2080_v0 = vpop.f32.mrb[41].mxu1  ;;  %v2010_v1 = vpop.f32.mrb[42].mxu0  ;;  %1023 = vmax.xlane.f32.xlu0 %v2765_v26  ;;  %v2774_v33 = vadd.f32 %v2676_v58, %v952_v57 }
 0x14d   : > { %v2081_v12 = vadd.f32 %v2080_v0, %v2079_v60  ;;  %v2082_v5 = vpop.f32.mrb[42].mxu1  ;;  %1069 = vmax.xlane.f32.xlu1 %v2768_v63  ;;  %v2011_v6 = vpop.f32.mrb[43].mxu0  ;;  %v2788_v44 = vadd.f32 %v2676_v58, %v976_v35 }
 0x14e   : > { %v838_v15 = vadd.f32 %v2009_v52, %v2667_v10  ;;  %v2012_v8 = vadd.f32 %v2011_v6, %v2010_v1  ;;  %v2083_v31 = vpop.f32.mrb[43].mxu1 }
 0x14f   : > { %v934_v37 = vadd.f32 %v2081_v12, %v2724_v42  ;;  %v2084_v41 = vadd.f32 %v2083_v31, %v2082_v5 }
 0x150   : > { %v953_v17 = vmul.f32 60.0, %v838_v15  ;;  %v841_v30 = vadd.f32 %v2012_v8, %v2671_v48  ;;  %1025 = vmax.xlane.f32.xlu0 %v2774_v33  ;;  %v962_v8 = vmul.f32 60.0, %v2688_v23 }
 0x151   : > { %v937_v43 = vadd.f32 %v2084_v41, %v2732_v9  ;;  %1071 = vmax.xlane.f32.xlu1 %v2778_v40  ;;  %v977_v18 = vmul.f32 60.0, %v934_v37  ;;  %v964_v41 = vmul.f32 60.0, %v2695_v39 }
 0x152   : > { %v954_v10 = vmul.f32 60.0, %v841_v30  ;;  %v2013_v19 = vpop.f32.mrb[44].mxu0  ;;  %v2785_v27 = vadd.f32 %v2676_v58, %v953_v17  ;;  %v2832_v37 = vadd.f32 %v2676_v58, %v962_v8 }
 0x153   : > { %v2085_v42 = vpop.f32.mrb[44].mxu1  ;;  %v2014_v47 = vpop.f32.mrb[45].mxu0  ;;  %v978_v59 = vmul.f32 60.0, %v937_v43  ;;  %v2798_v62 = vadd.f32 %v2676_v58, %v977_v18  ;;  %v2841_v17 = vadd.f32 %v2676_v58, %v964_v41 }
 0x154   : > { %v2015_v46 = vadd.f32 %v2014_v47, %v2013_v19  ;;  %v2086_v20 = vpop.f32.mrb[45].mxu1  ;;  %v2016_v48 = vpop.f32.mrb[46].mxu0  ;;  %1027 = vmax.xlane.f32.xlu0 %v2785_v27  ;;  %v2794_v57 = vadd.f32 %v2676_v58, %v954_v10 }
 0x155   : > { %v2087_v25 = vadd.f32 %v2086_v20, %v2085_v42  ;;  %v2088_v9 = vpop.f32.mrb[46].mxu1  ;;  %1073 = vmax.xlane.f32.xlu1 %v2788_v44  ;;  %v2017_v49 = vpop.f32.mrb[47].mxu0 }
 0x156   : > { %v846_v53 = vadd.f32 %v2665_v28, %v2015_v46  ;;  %v2018_v54 = vadd.f32 %v2017_v49, %v2016_v48  ;;  %v2089_v56 = vpop.f32.mrb[47].mxu1 }
 0x157   : > { %v942_v61 = vadd.f32 %v2722_v36, %v2087_v25  ;;  %v2090_v60 = vadd.f32 %v2089_v56, %v2088_v9  ;;  %v2808_v36 = vadd.f32 %v2676_v58, %v978_v59 }
 0x158   : > { %v955_v52 = vmul.f32 60.0, %v846_v53  ;;  %v849_v0 = vadd.f32 %v2669_v11, %v2018_v54  ;;  %1029 = vmax.xlane.f32.xlu0 %v2794_v57  ;;  %v961_v11 = vmul.f32 60.0, %v2685_v24  ;;  %v963_v24 = vmul.f32 60.0, %v2690_v13 }
 0x159   : > { %v945_v1 = vadd.f32 %v2729_v29, %v2090_v60  ;;  %1075 = vmax.xlane.f32.xlu1 %v2798_v62  ;;  %v979_v5 = vmul.f32 60.0, %v942_v61 }
 0x15a   : > { %v956_v28 = vmul.f32 60.0, %v849_v0  ;;  %v2805_v12 = vadd.f32 %v2676_v58, %v955_v52  ;;  %v2823_v31 = vadd.f32 %v2676_v58, %v961_v11  ;;  %v2837_v23 = vadd.f32 %v2676_v58, %v963_v24 }
 0x15b   : > { %v980_v29 = vmul.f32 60.0, %v945_v1  ;;  %v2817_v15 = vadd.f32 %v2676_v58, %v979_v5 }
 0x15c   : > { %1031 = vmax.xlane.f32.xlu0 %v2805_v12  ;;  %v2814_v6 = vadd.f32 %v2676_v58, %v956_v28 }
 0x15d   : > { %1077 = vmax.xlane.f32.xlu1 %v2808_v36  ;;  %v2826_v35 = vadd.f32 %v2676_v58, %v980_v29 }
 0x160   : > { %1033 = vmax.xlane.f32.xlu0 %v2814_v6 }
 0x161   : > { %1079 = vmax.xlane.f32.xlu1 %v2817_v15 }
 0x164   : > { %1043 = vmax.xlane.f32.xlu0 %v2823_v31 }
 0x165   : > { %1081 = vmax.xlane.f32.xlu1 %v2826_v35 }
 0x168   : > { %1045 = vmax.xlane.f32.xlu0 %v2832_v37 }
 0x16c   : > { %1047 = vmax.xlane.f32.xlu0 %v2837_v23 }
 0x170   : > { %1049 = vmax.xlane.f32.xlu0 %v2841_v17 }
 0x19e   : > { %v1040_v30 = vpop.xlane.xlu0 %1039 }
 0x19f   : > { %v1093_v13 = vsub.f32 %v2679_v4, %v1040_v30 }
 0x1a1   : > { %v1135_v43 = vmul.f32 1.442695, %v1093_v13 }
 0x1a2   : > { %v1036_v10 = vpop.xlane.xlu0 %1035 }
 0x1a3   : > { %2204 = vpow2.f32 %v1135_v43  ;;  %v1091_v19 = vsub.f32 %v2683_v21, %v1036_v10 }
 0x1a5   : > { %v1131_v18 = vmul.f32 1.442695, %v1091_v19 }
 0x1a6   : > { %v1042_v39 = vpop.xlane.xlu0 %1041 }
 0x1a7   : > { %2206 = vpow2.f32 %v1131_v18  ;;  %v1094_v42 = vsub.f32 %v2693_v38, %v1042_v39 }
 0x1a9   : > { %v1137_v47 = vmul.f32 1.442695, %v1094_v42 }
 0x1aa   : > { %v1038_v46 = vpop.xlane.xlu0 %1037 }
 0x1ab   : > { %2208 = vpow2.f32 %v1137_v47  ;;  %v1092_v58 = vsub.f32 %v2699_v16, %v1038_v46 }
 0x1ad   : > { %v2848_v20 = vpop.eup %2204  ;;  %v1133_v48 = vmul.f32 1.442695, %v1092_v58 }
 0x1ae   : > { %1199 = vadd.xlane.f32.xlu0 %v2848_v20 }
 0x1af   : > { %2210 = vpow2.f32 %v1133_v48 }
 0x1b1   : > { %v2851_v4 = vpop.eup %2206 }
 0x1b2   : > { %v1052_v25 = vpop.xlane.xlu0 %1051  ;;  %1195 = vadd.xlane.f32.xlu0 %v2851_v4 }
 0x1b3   : > { %v1099_v21 = vsub.f32 %v2703_v50, %v1052_v25 }
 0x1b4   : > { %v1054_v9 = vpop.xlane.xlu1 %1053 }
 0x1b5   : > { %v2855_v38 = vpop.eup %2208  ;;  %v1147_v49 = vmul.f32 1.442695, %v1099_v21  ;;  %v1100_v53 = vsub.f32 %v2707_v55, %v1054_v9 }
 0x1b6   : > { %1201 = vadd.xlane.f32.xlu0 %v2855_v38 }
 0x1b7   : > { %2212 = vpow2.f32 %v1147_v49  ;;  %v1149_v16 = vmul.f32 1.442695, %v1100_v53 }
 0x1b9   : > { %v2859_v54 = vpop.eup %2210  ;;  %2214 = vpow2.f32 %v1149_v16 }
 0x1ba   : > { %v1056_v56 = vpop.xlane.xlu1 %1055  ;;  %1197 = vadd.xlane.f32.xlu0 %v2859_v54 }
 0x1bb   : > { %v1101_v59 = vsub.f32 %v2713_v3, %v1056_v56 }
 0x1bd   : > { %v1151_v61 = vmul.f32 1.442695, %v1101_v59 }
 0x1be   : > { %v1058_v50 = vpop.xlane.xlu1 %1057 }
 0x1bf   : > { %2216 = vpow2.f32 %v1151_v61  ;;  %v1102_v60 = vsub.f32 %v2719_v34, %v1058_v50 }
 0x1c1   : > { %v2864_v52 = vpop.eup %2212  ;;  %v1153_v55 = vmul.f32 1.442695, %v1102_v60 }
 0x1c2   : > { %v1060_v0 = vpop.xlane.xlu1 %1059  ;;  %1211 = vadd.xlane.f32.xlu1 %v2864_v52 }
 0x1c3   : > { %2218 = vpow2.f32 %v1153_v55  ;;  %v1103_v1 = vsub.f32 %v2727_v14, %v1060_v0  ;;  %v2868_v28 = vpop.eup %2214 }
 0x1c5   : > { %v1155_v5 = vmul.f32 1.442695, %v1103_v1 }
 0x1c6   : > { %v1062_v11 = vpop.xlane.xlu1 %1061  ;;  %1213 = vadd.xlane.f32.xlu1 %v2868_v28 }
 0x1c7   : > { %2220 = vpow2.f32 %v1155_v5  ;;  %v1104_v3 = vsub.f32 %v2735_v45, %v1062_v11 }
 0x1c9   : > { %v2872_v29 = vpop.eup %2216  ;;  %v1157_v34 = vmul.f32 1.442695, %v1104_v3 }
 0x1ca   : > { %v1064_v8 = vpop.xlane.xlu1 %1063  ;;  %1215 = vadd.xlane.f32.xlu1 %v2872_v29 }
 0x1cb   : > { %2222 = vpow2.f32 %v1157_v34  ;;  %v1105_v24 = vsub.f32 %v2739_v32, %v1064_v8 }
 0x1cd   : > { %v2876_v41 = vpop.eup %2218  ;;  %v1159_v14 = vmul.f32 1.442695, %v1105_v24 }
 0x1ce   : > { %v1066_v30 = vpop.xlane.xlu1 %1065  ;;  %1217 = vadd.xlane.f32.xlu1 %v2876_v41 }
 0x1cf   : > { %2224 = vpow2.f32 %v1159_v14  ;;  %v1106_v13 = vsub.f32 %v2744_v7, %v1066_v30 }
 0x1d1   : > { %v2880_v43 = vpop.eup %2220  ;;  %v1161_v45 = vmul.f32 1.442695, %v1106_v13  ;;  %v2886_v39 = vpop.xlane.xlu0 %1019 }
 0x1d2   : > { %v1068_v10 = vpop.xlane.xlu1 %1067  ;;  %1219 = vadd.xlane.f32.xlu1 %v2880_v43 }
 0x1d3   : > { %2226 = vpow2.f32 %v1161_v45  ;;  %v1107_v19 = vsub.f32 %v2752_v2, %v1068_v10 }
 0x1d5   : > { %v2884_v18 = vpop.eup %2222  ;;  %v1163_v32 = vmul.f32 1.442695, %v1107_v19 }
 0x1d6   : > { %1221 = vadd.xlane.f32.xlu1 %v2884_v18  ;;  %v2889_v42 = vpop.xlane.xlu1 %1021 }
 0x1d7   : > { %2228 = vpow2.f32 %v1163_v32 }
 0x1d9   : > { %v2891_v7 = vpop.eup %2224  ;;  %v2893_v47 = vpop.xlane.xlu0 %1023 }
 0x1da   : > { %1223 = vadd.xlane.f32.xlu1 %v2891_v7  ;;  %v1070_v46 = vpop.xlane.xlu1 %1069 }
 0x1db   : > { %v1108_v58 = vsub.f32 %v2768_v63, %v1070_v46 }
 0x1dd   : > { %v2897_v2 = vpop.eup %2226  ;;  %v1165_v48 = vmul.f32 1.442695, %v1108_v58  ;;  %v2899_v25 = vpop.xlane.xlu0 %1025 }
 0x1de   : > { %1225 = vadd.xlane.f32.xlu1 %v2897_v2  ;;  %v1072_v21 = vpop.xlane.xlu1 %1071 }
 0x1df   : > { %2230 = vpow2.f32 %v1165_v48  ;;  %v1109_v9 = vsub.f32 %v2778_v40, %v1072_v21 }
 0x1e1   : > { %v2903_v49 = vpop.eup %2228  ;;  %v1167_v53 = vmul.f32 1.442695, %v1109_v9  ;;  %v2905_v16 = vpop.xlane.xlu0 %1027 }
 0x1e2   : > { %1227 = vadd.xlane.f32.xlu1 %v2903_v49  ;;  %v1074_v56 = vpop.xlane.xlu1 %1073 }
 0x1e3   : > { %2232 = vpow2.f32 %v1167_v53  ;;  %v1110_v63 = vsub.f32 %v2788_v44, %v1074_v56 }
 0x1e5   : > { %v1169_v59 = vmul.f32 1.442695, %v1110_v63  ;;  %v2909_v61 = vpop.xlane.xlu0 %1029 }
 0x1e6   : > { %v1076_v50 = vpop.xlane.xlu1 %1075 }
 0x1e7   : > { %2234 = vpow2.f32 %v1169_v59  ;;  %v1111_v60 = vsub.f32 %v2798_v62, %v1076_v50 }
 0x1e9   : > { %v2912_v55 = vpop.eup %2230  ;;  %v1171_v40 = vmul.f32 1.442695, %v1111_v60  ;;  %v2914_v0 = vpop.xlane.xlu0 %1031 }
 0x1ea   : > { %1229 = vadd.xlane.f32.xlu1 %v2912_v55  ;;  %v1078_v1 = vpop.xlane.xlu1 %1077 }
 0x1eb   : > { %2236 = vpow2.f32 %v1171_v40  ;;  %v1112_v5 = vsub.f32 %v2808_v36, %v1078_v1  ;;  %v1088_v40 = vsub.f32 %v2794_v57, %v2909_v61 }
 0x1ed   : > { %v2918_v11 = vpop.eup %2232  ;;  %v1173_v44 = vmul.f32 1.442695, %v1112_v5  ;;  %v2920_v3 = vpop.xlane.xlu0 %1033 }
 0x1ee   : > { %1231 = vadd.xlane.f32.xlu1 %v2918_v11  ;;  %v1080_v34 = vpop.xlane.xlu1 %1079 }
 0x1ef   : > { %2238 = vpow2.f32 %v1173_v44  ;;  %v1113_v62 = vsub.f32 %v2817_v15, %v1080_v34 }
 0x1f1   : > { %v2924_v8 = vpop.eup %2234  ;;  %v1175_v24 = vmul.f32 1.442695, %v1113_v62  ;;  %v1044_v14 = vpop.xlane.xlu0 %1043 }
 0x1f2   : > { %1233 = vadd.xlane.f32.xlu1 %v2924_v8  ;;  %v1082_v30 = vpop.xlane.xlu1 %1081  ;;  %v1095_v36 = vsub.f32 %v2823_v31, %v1044_v14  ;;  %v1083_v31 = vsub.f32 %v2749_v22, %v2886_v39 }
 0x1f3   : > { %2240 = vpow2.f32 %v1175_v24  ;;  %v1114_v13 = vsub.f32 %v2826_v35, %v1082_v30 }
 0x1f4   : > { %v1139_v45 = vmul.f32 1.442695, %v1095_v36  ;;  %v1115_v53 = vmul.f32 1.442695, %v1083_v31 }
 0x1f5   : > { %v2929_v10 = vpop.eup %2236  ;;  %v1177_v19 = vmul.f32 1.442695, %v1114_v13  ;;  %v1046_v32 = vpop.xlane.xlu0 %1045 }
 0x1f6   : > { %2242 = vpow2.f32 %v1139_v45  ;;  %1235 = vadd.xlane.f32.xlu1 %v2929_v10  ;;  %v1096_v15 = vsub.f32 %v2832_v37, %v1046_v32  ;;  %v1084_v37 = vsub.f32 %v2759_v51, %v2889_v42  ;;  %v1086_v42 = vsub.f32 %v2774_v33, %v2899_v25 }
 0x1f7   : > { %2244 = vpow2.f32 %v1177_v19  ;;  %v1125_v33 = vmul.f32 1.442695, %v1088_v40  ;;  %v1089_v25 = vsub.f32 %v2805_v12, %v2914_v0 }
 0x1f8   : > { %v1141_v46 = vmul.f32 1.442695, %v1096_v15  ;;  %v1117_v22 = vmul.f32 1.442695, %v1084_v37  ;;  %v1121_v50 = vmul.f32 1.442695, %v1086_v42 }
 0x1f9   : > { %v2933_v58 = vpop.eup %2238  ;;  %v1048_v48 = vpop.xlane.xlu0 %1047 }
 0x1fa   : > { %2246 = vpow2.f32 %v1141_v46  ;;  %1237 = vadd.xlane.f32.xlu1 %v2933_v58  ;;  %v1097_v35 = vsub.f32 %v2837_v23, %v1048_v48  ;;  %v1085_v23 = vsub.f32 %v2765_v26, %v2893_v47  ;;  %v1087_v26 = vsub.f32 %v2785_v27, %v2905_v16 }
 0x1fb   : > { %v1127_v27 = vmul.f32 1.442695, %v1089_v25  ;;  %v1090_v16 = vsub.f32 %v2814_v6, %v2920_v3 }
 0x1fc   : > { %v1143_v21 = vmul.f32 1.442695, %v1097_v35  ;;  %v1119_v51 = vmul.f32 1.442695, %v1085_v23  ;;  %v1123_v60 = vmul.f32 1.442695, %v1087_v26 }
 0x1fd   : > { %v2939_v9 = vpop.eup %2240  ;;  %v1050_v44 = vpop.xlane.xlu0 %1049  ;;  %v1129_v61 = vmul.f32 1.442695, %v1090_v16 }
 0x1fe   : > { %2248 = vpow2.f32 %v1143_v21  ;;  %1239 = vadd.xlane.f32.xlu1 %v2939_v9  ;;  %v1098_v34 = vsub.f32 %v2841_v17, %v1050_v44  ;;  %v2356_v21 = vmov 0.0  }
 0x1ff   : > { %2250 = vpow2.f32 %v1115_v53  ;;  %305 = vst [vmem:[#allocation2] sm:$0x1] %v2356_v21 }
 0x200   : > { %v2944_v56 = vpop.eup %2242  ;;  %2252 = vpow2.f32 %v1117_v22  ;;  %v1145_v12 = vmul.f32 1.442695, %v1098_v34 }
 0x201   : > { %v2946_v63 = vpop.eup %2244  ;;  %1203 = vadd.xlane.f32.xlu0 %v2944_v56  ;;  %2254 = vpow2.f32 %v1119_v51 }
 0x202   : > { %1241 = vadd.xlane.f32.xlu1 %v2946_v63  ;;  %2256 = vpow2.f32 %v1121_v50 }
 0x203   : > { %2258 = vpow2.f32 %v1123_v60 }
 0x204   : > { %v2952_v39 = vpop.eup %2246  ;;  %2260 = vpow2.f32 %v1125_v33 }
 0x205   : > { %1205 = vadd.xlane.f32.xlu0 %v2952_v39  ;;  %2262 = vpow2.f32 %v1127_v27 }
 0x206   : > { %2264 = vpow2.f32 %v1129_v61 }
 0x207   : > { %2266 = vpow2.f32 %v1145_v12 }
 0x208   : > { %v2957_v59 = vpop.eup %2248 }
 0x209   : > { %1207 = vadd.xlane.f32.xlu0 %v2957_v59  ;;  %v2962_v47 = vpop.eup %2250 }
 0x20a   : > { %v2967_v1 = vpop.eup %2252 }
 0x20b   : > { %v2972_v5 = vpop.eup %2254 }
 0x20c   : > { %v2977_v57 = vpop.eup %2256 }
 0x20d   : > { %1179 = vadd.xlane.f32.xlu0 %v2962_v47  ;;  %v2981_v62 = vpop.eup %2258 }
 0x20e   : > { %v2984_v0 = vpop.eup %2260 }
 0x20f   : > { %v2987_v6 = vpop.eup %2262 }
 0x210   : > { %v2990_v3 = vpop.eup %2264 }
 0x211   : > { %1181 = vadd.xlane.f32.xlu0 %v2967_v1  ;;  %v2993_v17 = vpop.eup %2266 }
 0x215   : > { %1183 = vadd.xlane.f32.xlu0 %v2972_v5 }
 0x219   : > { %1185 = vadd.xlane.f32.xlu0 %v2977_v57 }
 0x21d   : > { %1187 = vadd.xlane.f32.xlu0 %v2981_v62 }
 0x221   : > { %1189 = vadd.xlane.f32.xlu0 %v2984_v0 }
 0x225   : > { %1191 = vadd.xlane.f32.xlu0 %v2987_v6 }
 0x229   : > { %1193 = vadd.xlane.f32.xlu0 %v2990_v3 }
 0x22d   : > { %1209 = vadd.xlane.f32.xlu0 %v2993_v17 }
 0x24f   : > { %v1212_v24 = vpop.xlane.xlu1 %1211 }
 0x250   : > { %2268 = vrcp.f32 %v1212_v24 }
 0x253   : > { %v1214_v14 = vpop.xlane.xlu1 %1213 }
 0x254   : > { %2270 = vrcp.f32 %v1214_v14 }
 0x257   : > { %v1216_v30 = vpop.xlane.xlu1 %1215 }
 0x258   : > { %2272 = vrcp.f32 %v1216_v30 }
 0x25a   : > { %v2269_v36 = vpop.eup %2268 }
 0x25b   : > { %v1291_v13 = vmul.f32 %v2269_v36, %v1212_v24  ;;  %v1218_v45 = vpop.xlane.xlu1 %1217 }
 0x25c   : > { %2274 = vrcp.f32 %v1218_v45 }
 0x25d   : > { %v1323_v19 = vsub.f32 2.0, %v1291_v13 }
 0x25e   : > { %v2271_v32 = vpop.eup %2270 }
 0x25f   : > { %v1292_v15 = vmul.f32 %v2271_v32, %v1214_v14  ;;  %v1220_v46 = vpop.xlane.xlu1 %1219  ;;  %v1355_v48 = vmul.f32 %v2269_v36, %v1323_v19 }
 0x260   : > { %2276 = vrcp.f32 %v1220_v46 }
 0x261   : > { %v1324_v31 = vsub.f32 2.0, %v1292_v15  ;;  %v2997_v35 = vmul.f32 %v2864_v52, %v1355_v48 }
 0x262   : > { %v2273_v53 = vpop.eup %2272 }
 0x263   : > { %v1356_v37 = vmul.f32 %v2271_v32, %v1324_v31  ;;  %v1293_v22 = vmul.f32 %v2273_v53, %v1216_v30  ;;  %1435 = vxpose.xlu1.b32.start [1/16] %v2997_v35, 128  ;;  %v1222_v23 = vpop.xlane.xlu1 %1221  ;;  %v3020_v31 = vpop.xlane.xlu0 %1199 }
 0x264   : > { %2278 = vrcp.f32 %v1222_v23 }
 0x265   : > { %v1325_v51 = vsub.f32 2.0, %v1293_v22  ;;  %v3001_v42 = vmul.f32 %v2868_v28, %v1356_v37 }
 0x266   : > { %v2275_v50 = vpop.eup %2274 }
 0x267   : > { %v1357_v26 = vmul.f32 %v2273_v53, %v1325_v51  ;;  %v1294_v60 = vmul.f32 %v2275_v50, %v1218_v45  ;;  %1436 = vxpose.xlu1.b32.cont [2/16] %v3001_v42, 128  ;;  %v1224_v52 = vpop.xlane.xlu1 %1223 }
 0x268   : > { %2280 = vrcp.f32 %v1224_v52 }
 0x269   : > { %v1326_v40 = vsub.f32 2.0, %v1294_v60  ;;  %v3005_v33 = vmul.f32 %v2872_v29, %v1357_v26 }
 0x26a   : > { %v2277_v25 = vpop.eup %2276 }
 0x26b   : > { %v1358_v27 = vmul.f32 %v2275_v50, %v1326_v40  ;;  %v1295_v16 = vmul.f32 %v2277_v25, %v1220_v46  ;;  %1437 = vxpose.xlu1.b32.cont [3/16] %v3005_v33, 128  ;;  %v1226_v44 = vpop.xlane.xlu1 %1225  ;;  %v3029_v50 = vpop.xlane.xlu0 %1195 }
 0x26c   : > { %2282 = vrcp.f32 %v1226_v44 }
 0x26d   : > { %v1327_v28 = vsub.f32 2.0, %v1295_v16  ;;  %v3009_v61 = vmul.f32 %v2876_v41, %v1358_v27 }
 0x26e   : > { %v2279_v34 = vpop.eup %2278 }
 0x26f   : > { %v1359_v12 = vmul.f32 %v2277_v25, %v1327_v28  ;;  %v1296_v24 = vmul.f32 %v2279_v34, %v1222_v23  ;;  %1438 = vxpose.xlu1.b32.cont [4/16] %v3009_v61, 128  ;;  %v1228_v14 = vpop.xlane.xlu1 %1227  ;;  %v3036_v27 = vpop.xlane.xlu0 %1201 }
 0x270   : > { %2284 = vrcp.f32 %v1228_v14 }
 0x271   : > { %v1328_v29 = vsub.f32 2.0, %v1296_v24  ;;  %v3013_v30 = vmul.f32 %v2880_v43, %v1359_v12 }
 0x272   : > { %v2281_v36 = vpop.eup %2280 }
 0x273   : > { %v1360_v13 = vmul.f32 %v2279_v34, %v1328_v29  ;;  %v1297_v45 = vmul.f32 %v2281_v36, %v1224_v52  ;;  %1439 = vxpose.xlu1.b32.cont [5/16] %v3013_v30, 128 }
 0x275   : > { %v1329_v19 = vsub.f32 2.0, %v1297_v45  ;;  %v3017_v41 = vmul.f32 %v2884_v18, %v1360_v13 }
 0x276   : > { %v2283_v32 = vpop.eup %2282 }
 0x277   : > { %v1361_v15 = vmul.f32 %v2281_v36, %v1329_v19  ;;  %v1298_v46 = vmul.f32 %v2283_v32, %v1226_v44  ;;  %1440 = vxpose.xlu1.b32.cont [6/16] %v3017_v41, 128  ;;  %v1230_v48 = vpop.xlane.xlu1 %1229 }
 0x278   : > { %2286 = vrcp.f32 %v1230_v48 }
 0x279   : > { %v1330_v43 = vsub.f32 2.0, %v1298_v46  ;;  %v3023_v21 = vmul.f32 %v2891_v7, %v1361_v15 }
 0x27a   : > { %v2285_v53 = vpop.eup %2284 }
 0x27b   : > { %v1362_v37 = vmul.f32 %v2283_v32, %v1330_v43  ;;  %v1299_v22 = vmul.f32 %v2285_v53, %v1228_v14  ;;  %1441 = vxpose.xlu1.b32.cont [7/16] %v3023_v21, 128  ;;  %v1232_v18 = vpop.xlane.xlu1 %1231 }
 0x27c   : > { %2288 = vrcp.f32 %v1232_v18 }
 0x27d   : > { %v1331_v23 = vsub.f32 2.0, %v1299_v22  ;;  %v3027_v51 = vmul.f32 %v2897_v2, %v1362_v37 }
 0x27f   : > { %v1363_v26 = vmul.f32 %v2285_v53, %v1331_v23  ;;  %1442 = vxpose.xlu1.b32.cont [8/16] %v3027_v51, 128  ;;  %v1234_v60 = vpop.xlane.xlu1 %1233 }
 0x280   : > { %2290 = vrcp.f32 %v1234_v60 }
 0x281   : > { %v3033_v7 = vmul.f32 %v2903_v49, %v1363_v26  ;;  %v3039_v49 = vpop.xlane.xlu0 %1197 }
 0x282   : > { %v2287_v52 = vpop.eup %2286 }
 0x283   : > { %v1300_v40 = vmul.f32 %v2287_v52, %v1230_v48  ;;  %1443 = vxpose.xlu1.b32.cont [9/16] %v3033_v7, 128  ;;  %v1236_v25 = vpop.xlane.xlu1 %1235 }
 0x284   : > { %2292 = vrcp.f32 %v1236_v25 }
 0x285   : > { %v1332_v2 = vsub.f32 2.0, %v1300_v40 }
 0x286   : > { %v2289_v16 = vpop.eup %2288 }
 0x287   : > { %v1364_v44 = vmul.f32 %v2287_v52, %v1332_v2  ;;  %v1301_v28 = vmul.f32 %v2289_v16, %v1232_v18  ;;  %v1238_v34 = vpop.xlane.xlu1 %1237 }
 0x288   : > { %2294 = vrcp.f32 %v1238_v34 }
 0x289   : > { %v1333_v12 = vsub.f32 2.0, %v1301_v28  ;;  %v1396_v24 = vmul.f32 %v2912_v55, %v1364_v44 }
 0x28a   : > { %v2291_v14 = vpop.eup %2290 }
 0x28b   : > { %v1365_v29 = vmul.f32 %v2289_v16, %v1333_v12  ;;  %v1302_v36 = vmul.f32 %v2291_v14, %v1234_v60  ;;  %1444 = vxpose.xlu1.b32.cont [10/16] %v1396_v24, 128  ;;  %v1240_v13 = vpop.xlane.xlu1 %1239 }
 0x28c   : > { %2296 = vrcp.f32 %v1240_v13 }
 0x28d   : > { %v1334_v45 = vsub.f32 2.0, %v1302_v36  ;;  %v1397_v19 = vmul.f32 %v2918_v11, %v1365_v29 }
 0x28e   : > { %v2293_v32 = vpop.eup %2292  ;;  %v3042_v15 = vpop.xlane.xlu0 %1203 }
 0x28f   : > { %v1366_v46 = vmul.f32 %v2291_v14, %v1334_v45  ;;  %v1303_v48 = vmul.f32 %v2293_v32, %v1236_v25  ;;  %1445 = vxpose.xlu1.b32.cont [11/16] %v1397_v19, 128  ;;  %v1242_v43 = vpop.xlane.xlu1 %1241 }
 0x290   : > { %2298 = vrcp.f32 %v1242_v43 }
 0x291   : > { %v1335_v55 = vsub.f32 2.0, %v1303_v48  ;;  %v1398_v53 = vmul.f32 %v2924_v8, %v1366_v46 }
 0x292   : > { %v2295_v37 = vpop.eup %2294  ;;  %v3045_v22 = vpop.xlane.xlu0 %1205 }
 0x293   : > { %v1367_v18 = vmul.f32 %v2293_v32, %v1335_v55  ;;  %v1304_v23 = vmul.f32 %v2295_v37, %v1238_v34  ;;  %1446 = vxpose.xlu1.b32.cont [12/16] %v1398_v53, 128 }
 0x295   : > { %v1336_v26 = vsub.f32 2.0, %v1304_v23  ;;  %v1399_v11 = vmul.f32 %v2929_v10, %v1367_v18 }
 0x296   : > { %v2297_v60 = vpop.eup %2296  ;;  %v3048_v52 = vpop.xlane.xlu0 %1207 }
 0x297   : > { %v1368_v40 = vmul.f32 %v2295_v37, %v1336_v26  ;;  %v1305_v25 = vmul.f32 %v2297_v60, %v1240_v13  ;;  %1447 = vxpose.xlu1.b32.cont [13/16] %v1399_v11, 128 }
 0x299   : > { %v1337_v2 = vsub.f32 2.0, %v1305_v25  ;;  %v1400_v16 = vmul.f32 %v2933_v58, %v1368_v40 }
 0x29a   : > { %v2299_v44 = vpop.eup %2298  ;;  %v1180_v8 = vpop.xlane.xlu0 %1179 }
 0x29b   : > { %v1369_v28 = vmul.f32 %v2297_v60, %v1337_v2  ;;  %v1306_v12 = vmul.f32 %v2299_v44, %v1242_v43  ;;  %1448 = vxpose.xlu1.b32.cont [14/16] %v1400_v16, 128  ;;  %2300 = vrcp.f32 %v1180_v8 }
 0x29d   : > { %v1338_v34 = vsub.f32 2.0, %v1306_v12  ;;  %v1401_v24 = vmul.f32 %v2939_v9, %v1369_v28 }
 0x29e   : > { %v1182_v14 = vpop.xlane.xlu0 %1181 }
 0x29f   : > { %v1370_v10 = vmul.f32 %v2299_v44, %v1338_v34  ;;  %1449 = vxpose.xlu1.b32.cont [15/16] %v1401_v24, 128  ;;  %2302 = vrcp.f32 %v1182_v14 }
 0x2a1   : > { %v1402_v29 = vmul.f32 %v2946_v63, %v1370_v10 }
 0x2a2   : > { %v1184_v36 = vpop.xlane.xlu0 %1183 }
 0x2a3   : > { %1450 = vxpose.xlu1.b32.end [16/16] %v1402_v29, 128  ;;  %2304 = vrcp.f32 %v1184_v36 }
 0x2a4   : > { %2306 = vrcp.f32 %v3029_v50 }
 0x2a5   : > { %v2301_v13 = vpop.eup %2300  ;;  %2308 = vrcp.f32 %v3042_v15 }
 0x2a6   : > { %v1275_v58 = vmul.f32 %v2301_v13, %v1180_v8  ;;  %v1186_v45 = vpop.xlane.xlu0 %1185 }
 0x2a7   : > { %2310 = vrcp.f32 %v1186_v45 }
 0x2a8   : > { %2312 = vrcp.f32 %v3039_v49  ;;  %v1307_v9 = vsub.f32 2.0, %v1275_v58 }
 0x2a9   : > { %v2303_v19 = vpop.eup %2302  ;;  %2314 = vrcp.f32 %v3020_v31 }
 0x2aa   : > { %v1276_v32 = vmul.f32 %v2303_v19, %v1182_v14  ;;  %v1188_v46 = vpop.xlane.xlu0 %1187  ;;  %v1339_v63 = vmul.f32 %v2301_v13, %v1307_v9  ;;  %v1550_v13 = vlaneseq }
 0x2ab   : > { %2316 = vrcp.f32 %v1188_v46 }
 0x2ac   : > { %2318 = vrcp.f32 %v3045_v22  ;;  %v1308_v48 = vsub.f32 2.0, %v1276_v32  ;;  %v3059_v43 = vmul.f32 %v2962_v47, %v1339_v63 }
 0x2ad   : > { %v2305_v55 = vpop.eup %2304  ;;  %2320 = vrcp.f32 %v3048_v52 }
 0x2ae   : > { %v1340_v53 = vmul.f32 %v2303_v19, %v1308_v48  ;;  %v1277_v37 = vmul.f32 %v2305_v55, %v1184_v36  ;;  %1403 = vxpose.xlu0.b32.start [1/16] %v3059_v43, 128  ;;  %v1190_v18 = vpop.xlane.xlu0 %1189  ;;  %v2307_v23 = vpop.eup %2306 }
 0x2af   : > { %2322 = vrcp.f32 %v1190_v18  ;;  %v2309_v26 = vpop.eup %2308  ;;  %v1283_v25 = vmul.f32 %v2307_v23, %v3029_v50 }
 0x2b0   : > { %2324 = vrcp.f32 %v3036_v27  ;;  %v1309_v11 = vsub.f32 2.0, %v1277_v37  ;;  %v3065_v60 = vmul.f32 %v2967_v1, %v1340_v53  ;;  %v1287_v28 = vmul.f32 %v2309_v26, %v3042_v15 }
 0x2b1   : > { %v2311_v40 = vpop.eup %2310  ;;  %v1315_v10 = vsub.f32 2.0, %v1283_v25  ;;  %v1551_v37 = vshrl.u32 %v1550_v13, 7 }
 0x2b2   : > { %v2313_v47 = vpop.eup %2312  ;;  %v1341_v2 = vmul.f32 %v2305_v55, %v1309_v11  ;;  %v1278_v16 = vmul.f32 %v2311_v40, %v1186_v45  ;;  %1404 = vxpose.xlu0.b32.cont [2/16] %v3065_v60, 128  ;;  %v1192_v44 = vpop.xlane.xlu0 %1191  ;;  %v1319_v45 = vsub.f32 2.0, %v1287_v28 }
 0x2b3   : > { %2326 = vrcp.f32 %v1192_v44  ;;  %v2315_v8 = vpop.eup %2314  ;;  %v1284_v1 = vmul.f32 %v2313_v47, %v3039_v49  ;;  %v1347_v48 = vmul.f32 %v2307_v23, %v1315_v10 }
 0x2b4   : > { %v1310_v12 = vsub.f32 2.0, %v1278_v16  ;;  %v3071_v34 = vmul.f32 %v2972_v5, %v1341_v2  ;;  %v1285_v19 = vmul.f32 %v2315_v8, %v3020_v31 }
 0x2b5   : > { %v2317_v24 = vpop.eup %2316  ;;  %v1316_v32 = vsub.f32 2.0, %v1284_v1  ;;  %v1575_v1 = vadd.s32 192, %v1551_v37 }
 0x2b6   : > { %v2319_v14 = vpop.eup %2318  ;;  %v1342_v29 = vmul.f32 %v2311_v40, %v1310_v12  ;;  %v1279_v50 = vmul.f32 %v2317_v24, %v1188_v46  ;;  %1405 = vxpose.xlu0.b32.cont [3/16] %v3071_v34, 128  ;;  %v1194_v36 = vpop.xlane.xlu0 %1193  ;;  %v1351_v40 = vmul.f32 %v2309_v26, %v1319_v45  ;;  %v1317_v31 = vsub.f32 2.0, %v1285_v19 }
 0x2b7   : > { %2328 = vrcp.f32 %v1194_v36  ;;  %v2321_v58 = vpop.eup %2320  ;;  %v1288_v49 = vmul.f32 %v2319_v14, %v3045_v22  ;;  %v1348_v22 = vmul.f32 %v2313_v47, %v1316_v32  ;;  %vm1640_vm0 = vcmp.lt.s32.totalorder %v1575_v1, 196 }
 0x2b8   : > { %v1311_v9 = vsub.f32 2.0, %v1279_v50  ;;  %v3076_v15 = vmul.f32 %v2977_v57, %v1342_v29  ;;  %v1289_v11 = vmul.f32 %v2321_v58, %v3048_v52  ;;  %v1383_v29 = vmul.f32 %v2944_v56, %v1351_v40 }
 0x2b9   : > { %v2323_v5 = vpop.eup %2322  ;;  %v1320_v28 = vsub.f32 2.0, %v1288_v49  ;;  %v1349_v13 = vmul.f32 %v2315_v8, %v1317_v31  ;;  %v1380_v45 = vmul.f32 %v2859_v54, %v1348_v22 }
 0x2ba   : > { %v2325_v63 = vpop.eup %2324  ;;  %v1343_v46 = vmul.f32 %v2317_v24, %v1311_v9  ;;  %v1280_v55 = vmul.f32 %v2323_v5, %v1190_v18  ;;  %1406 = vxpose.xlu0.b32.cont [4/16] %v3076_v15, 128  ;;  %v1210_v53 = vpop.xlane.xlu0 %1209  ;;  %v1379_v24 = vmul.f32 %v2851_v4, %v1347_v48  ;;  %v1321_v52 = vsub.f32 2.0, %v1289_v11 }
 0x2bb   : > { %2330 = vrcp.f32 %v1210_v53  ;;  %v1286_v16 = vmul.f32 %v2325_v63, %v3036_v27  ;;  %v1352_v47 = vmul.f32 %v2319_v14, %v1320_v28  ;;  %v1381_v14 = vmul.f32 %v2848_v20, %v1349_v13 }
 0x2bc   : > { %v1375_v57 = vmul.f32 %v2981_v62, %v1343_v46  ;;  %v1312_v25 = vsub.f32 2.0, %v1280_v55 }
 0x2bd   : > { %v2327_v2 = vpop.eup %2326  ;;  %v1318_v27 = vsub.f32 2.0, %v1286_v16  ;;  %v1384_v54 = vmul.f32 %v2952_v39, %v1352_v47 }
 0x2be   : > { %v1745_v23 = vmax.f32 %v3059_v43, %v1375_v57  ;;  %v1344_v18 = vmul.f32 %v2323_v5, %v1312_v25  ;;  %v1281_v12 = vmul.f32 %v2327_v2, %v1192_v44  ;;  %1407 = vxpose.xlu0.b32.cont [5/16] %v1375_v57, 128  ;;  %v1353_v5 = vmul.f32 %v2321_v58, %v1321_v52 }
 0x2bf   : > { %v1350_v8 = vmul.f32 %v2325_v63, %v1318_v27  ;;  %v1736_v58 = vsel %vm1640_vm0, %v3033_v7, 0.0 }
 0x2c0   : > { %v1313_v10 = vsub.f32 2.0, %v1281_v12  ;;  %v1376_v26 = vmul.f32 %v2984_v0, %v1344_v18  ;;  %v1749_v62 = vmax.f32 %v1745_v23, %v1379_v24 }
 0x2c1   : > { %v2329_v50 = vpop.eup %2328 }
 0x2c2   : > { %v1345_v43 = vmul.f32 %v2327_v2, %v1313_v10  ;;  %v1282_v9 = vmul.f32 %v2329_v50, %v1194_v36  ;;  %1408 = vxpose.xlu0.b32.cont [6/16] %v1376_v26, 128  ;;  %v1746_v44 = vmax.f32 %v3065_v60, %v1376_v26  ;;  %v1753_v4 = vmax.f32 %v1749_v62, %v1383_v29 }
 0x2c4   : > { %v1314_v19 = vsub.f32 2.0, %v1282_v9  ;;  %v1377_v0 = vmul.f32 %v2987_v6, %v1345_v43  ;;  %v1750_v32 = vmax.f32 %v1746_v44, %v1380_v45  ;;  %v1757_v56 = vmax.f32 %v1753_v4, %v2997_v35 }
 0x2c5   : > { %v2331_v49 = vpop.eup %2330  ;;  %v1385_v6 = vmul.f32 %v2957_v59, %v1353_v5 }
 0x2c6   : > { %v1346_v48 = vmul.f32 %v2329_v50, %v1314_v19  ;;  %v1290_v36 = vmul.f32 %v2331_v49, %v1210_v53  ;;  %1409 = vxpose.xlu0.b32.cont [7/16] %v1377_v0, 128  ;;  %v1747_v60 = vmax.f32 %v3071_v34, %v1377_v0  ;;  %v1761_v46 = vmax.f32 %v1757_v56, %v3013_v30 }
 0x2c7   : > { %v1754_v55 = vmax.f32 %v1750_v32, %v1384_v54  ;;  %v1382_v34 = vmul.f32 %v2855_v38, %v1350_v8 }
 0x2c8   : > { %v1322_v37 = vsub.f32 2.0, %v1290_v36  ;;  %v1378_v35 = vmul.f32 %v2990_v3, %v1346_v48  ;;  %v1751_v63 = vmax.f32 %v1747_v60, %v1381_v14  ;;  %v1765_v11 = vmax.f32 %v1761_v46, %v1736_v58 }
 0x2c9   : > { %v1758_v20 = vmax.f32 %v1754_v55, %v3001_v42 }
 0x2ca   : > { %v1354_v39 = vmul.f32 %v2331_v49, %v1322_v37  ;;  %1410 = vxpose.xlu0.b32.cont [8/16] %v1378_v35, 128  ;;  %v1748_v53 = vmax.f32 %v3076_v15, %v1378_v35  ;;  %v1755_v40 = vmax.f32 %v1751_v63, %v1385_v6 }
 0x2cb   : > { %v1762_v7 = vmax.f32 %v1758_v20, %v3017_v41  ;;  %v1769_v41 = vmax.f32 %v1765_v11, 0.0 }
 0x2cc   : > { %v1752_v30 = vmax.f32 %v1748_v53, %v1382_v34  ;;  %v1759_v57 = vmax.f32 %v1755_v40, %v3005_v33  ;;  %v1386_v59 = vmul.f32 %v2993_v17, %v1354_v39 }
 0x2cd   : > { %v1766_v2 = vmax.f32 %v1762_v7, 0.0 }
 0x2ce   : > { %1411 = vxpose.xlu0.b32.cont [9/16] %v1379_v24, 128  ;;  %v1763_v3 = vmax.f32 %v1759_v57, %v3023_v21  ;;  %v1756_v25 = vmax.f32 %v1752_v30, %v1386_v59 }
 0x2cf   : > { %v1770_v38 = vmax.f32 %v1766_v2, 0.0 }
 0x2d0   : > { %v1760_v42 = vmax.f32 %v1756_v25, %v3009_v61  ;;  %v1767_v31 = vmax.f32 %v1763_v3, 0.0 }
 0x2d1   : > { %v1773_v28 = vmax.f32 %v1769_v41, %v1770_v38 }
 0x2d2   : > { %1412 = vxpose.xlu0.b32.cont [10/16] %v1380_v45, 128  ;;  %v1764_v15 = vmax.f32 %v1760_v42, %v3027_v51  ;;  %v1771_v22 = vmax.f32 %v1767_v31, 0.0  ;;  %v1744_v51 = vld [vmem:[#allocation2] sm:$0x1] }
 0x2d4   : > { %v1768_v16 = vmax.f32 %v1764_v15, 0.0 }
 0x2d6   : > { %1413 = vxpose.xlu0.b32.cont [11/16] %v1381_v14, 128  ;;  %v1772_v33 = vmax.f32 %v1768_v16, 0.0 }
 0x2d8   : > { %v1774_v17 = vmax.f32 %v1771_v22, %v1772_v33 }
 0x2da   : > { %1414 = vxpose.xlu0.b32.cont [12/16] %v1382_v34, 128  ;;  %v1775_v23 = vmax.f32 %v1773_v28, %v1774_v17 }
 0x2dc   : > { %v1776_v21 = vrot.slane %v1775_v23, 4 }
 0x2de   : > { %1415 = vxpose.xlu0.b32.cont [13/16] %v1383_v29, 128  ;;  %v1777_v18 = vmax.f32 %v1775_v23, %v1776_v21 }
 0x2e0   : > { %v1778_v61 = vrot.slane %v1777_v18, 2 }
 0x2e2   : > { %1416 = vxpose.xlu0.b32.cont [14/16] %v1384_v54, 128  ;;  %v1779_v12 = vmax.f32 %v1777_v18, %v1778_v61 }
 0x2e4   : > { %v1780_v24 = vrot.slane %v1779_v12, 1 }
 0x2e6   : > { %1417 = vxpose.xlu0.b32.cont [15/16] %v1385_v6, 128  ;;  %v1781_v1 = vmax.f32 %v1779_v12, %v1780_v24 }
 0x2e7   : > { %v1451_v52 = vpop.trf.xlu1 }
 0x2e8   : > { %v1782_v10 = vmax.f32 %v1744_v51, %v1781_v1  ;;  %1468 = vst [vmem:[%s3113_s12 + $0x8] sm:$0xff] %v1451_v52 }
 0x2ea   : > { %1418 = vxpose.xlu0.b32.end [16/16] %v1386_v59, 128  ;;  %1783 = vst [vmem:[#allocation2] sm:$0x1] %v1782_v10 }
 0x2eb   : > { %v1452_v26 = vpop.trf.xlu1 }
 0x2ec   : > { %1470 = vst [vmem:[%s3113_s12 + $0x18] sm:$0xff] %v1452_v26 }
 0x2ef   : > { %v1453_v62 = vpop.trf.xlu1 }
 0x2f0   : > { %1472 = vst [vmem:[%s3113_s12 + $0x28] sm:$0xff] %v1453_v62 }
 0x2f1   : > { %v1787_v29 = vld [vmem:[#allocation2] sm:$0x1] }
 0x2f2   : > { %1788 = vst [vmem:[%s299_s14] sm:$0x1] %v1787_v29 }
 0x2f3   : > { %v1454_v50 = vpop.trf.xlu1 }
 0x2f4   : > { %1474 = vst [vmem:[%s3113_s12 + $0x38] sm:$0xff] %v1454_v50 }
 0x2f7   : > { %v1455_v13 = vpop.trf.xlu1 }
 0x2f8   : > { %1476 = vst [vmem:[%s3113_s12 + $0x48] sm:$0xff] %v1455_v13 }
 0x2fb   : > { %v1456_v27 = vpop.trf.xlu1 }
 0x2fc   : > { %1478 = vst [vmem:[%s3113_s12 + $0x58] sm:$0xff] %v1456_v27 }
 0x2ff   : > { %v1457_v47 = vpop.trf.xlu1 }
 0x300   : > { %1480 = vst [vmem:[%s3113_s12 + $0x68] sm:$0xff] %v1457_v47 }
 0x303   : > { %v1458_v45 = vpop.trf.xlu1 }
 0x304   : > { %1482 = vst [vmem:[%s3113_s12 + $0x78] sm:$0xff] %v1458_v45 }
 0x307   : > { %v1459_v43 = vpop.trf.xlu1 }
 0x308   : > { %1484 = vst [vmem:[%s3113_s12 + $0x88] sm:$0xff] %v1459_v43 }
 0x30b   : > { %v1460_v9 = vpop.trf.xlu1 }
 0x30c   : > { %1486 = vst [vmem:[%s3113_s12 + $0x98] sm:$0xff] %v1460_v9 }
 0x30f   : > { %v1461_v44 = vpop.trf.xlu1 }
 0x310   : > { %1488 = vst [vmem:[%s3113_s12 + $0xa8] sm:$0xff] %v1461_v44 }
 0x313   : > { %v1462_v4 = vpop.trf.xlu1 }
 0x314   : > { %1490 = vst [vmem:[%s3113_s12 + $0xb8] sm:$0xff] %v1462_v4 }
 0x317   : > { %v1463_v5 = vpop.trf.xlu1 }
 0x318   : > { %1492 = vst [vmem:[%s3113_s12 + $0xc8] sm:$0xff] %v1463_v5 }
 0x31b   : > { %v1464_v19 = vpop.trf.xlu1 }
 0x31c   : > { %1494 = vst [vmem:[%s3113_s12 + $0xd8] sm:$0xff] %v1464_v19 }
 0x31f   : > { %v1465_v0 = vpop.trf.xlu1 }
 0x320   : > { %1496 = vst [vmem:[%s3113_s12 + $0xe8] sm:$0xff] %v1465_v0 }
 0x323   : > { %v1466_v32 = vpop.trf.xlu1 }
 0x324   : > { %1498 = vst [vmem:[%s3113_s12 + $0xf8] sm:$0xff] %v1466_v32 }
 0x32e   : > { %v1419_v56 = vpop.trf.xlu0 }
 0x32f   : > { %1467 = vst [vmem:[%s3113_s12] sm:$0xff] %v1419_v56 }
 0x332   : > { %v1420_v49 = vpop.trf.xlu0 }
 0x333   : > { %1469 = vst [vmem:[%s3113_s12 + $0x10] sm:$0xff] %v1420_v49 }
 0x336   : > { %v1421_v8 = vpop.trf.xlu0 }
 0x337   : > { %1471 = vst [vmem:[%s3113_s12 + $0x20] sm:$0xff] %v1421_v8 }
 0x33a   : > { %v1422_v14 = vpop.trf.xlu0 }
 0x33b   : > { %1473 = vst [vmem:[%s3113_s12 + $0x30] sm:$0xff] %v1422_v14 }
 0x33e   : > { %v1423_v54 = vpop.trf.xlu0 }
 0x33f   : > { %1475 = vst [vmem:[%s3113_s12 + $0x40] sm:$0xff] %v1423_v54 }
 0x342   : > { %v1424_v48 = vpop.trf.xlu0 }
 0x343   : > { %1477 = vst [vmem:[%s3113_s12 + $0x50] sm:$0xff] %v1424_v48 }
 0x346   : > { %v1425_v36 = vpop.trf.xlu0 }
 0x347   : > { %1479 = vst [vmem:[%s3113_s12 + $0x60] sm:$0xff] %v1425_v36 }
 0x34a   : > { %v1426_v60 = vpop.trf.xlu0 }
 0x34b   : > { %1481 = vst [vmem:[%s3113_s12 + $0x70] sm:$0xff] %v1426_v60 }
 0x34e   : > { %v1427_v46 = vpop.trf.xlu0 }
 0x34f   : > { %1483 = vst [vmem:[%s3113_s12 + $0x80] sm:$0xff] %v1427_v46 }
 0x352   : > { %v1428_v58 = vpop.trf.xlu0 }
 0x353   : > { %1485 = vst [vmem:[%s3113_s12 + $0x90] sm:$0xff] %v1428_v58 }
 0x356   : > { %v1429_v55 = vpop.trf.xlu0 }
 0x357   : > { %1487 = vst [vmem:[%s3113_s12 + $0xa0] sm:$0xff] %v1429_v55 }
 0x35a   : > { %v1430_v6 = vpop.trf.xlu0 }
 0x35b   : > { %1489 = vst [vmem:[%s3113_s12 + $0xb0] sm:$0xff] %v1430_v6 }
 0x35e   : > { %v1431_v37 = vpop.trf.xlu0 }
 0x35f   : > { %1491 = vst [vmem:[%s3113_s12 + $0xc0] sm:$0xff] %v1431_v37 }
 0x362   : > { %v1432_v35 = vpop.trf.xlu0 }
 0x363   : > { %1493 = vst [vmem:[%s3113_s12 + $0xd0] sm:$0xff] %v1432_v35 }
 0x366   : > { %v1433_v63 = vpop.trf.xlu0 }
 0x367   : > { %1495 = vst [vmem:[%s3113_s12 + $0xe0] sm:$0xff] %v1433_v63 }
 0x36a   : > { %v1434_v11 = vpop.trf.xlu0 }
 0x36b   : > { %1497 = vst [vmem:[%s3113_s12 + $0xf0] sm:$0xff] %v1434_v11 }
 0x36c PF: > { %s16_s20 = sadd.s32 1, %s2354_s20   ;;  %s3166_s18 = smov %s2350_s19 }
 0x36d   : > { %p13_p5 = scmp.ge.s32.totalorder %s16_s20, 4   ;;  %s3167_s19 = smov %s3169_s21 }
 0x36f   :  { %15 = sbr.rel (!%p13_p5) target bundleno = 2 (0x2), region = 94 }

</bundles_post_ra>
